<compile_context>
chip_gen: v7x
topology: tpu7x:2x2x1
jax: 0.10.0
libtpu: 0.0.40
codegen_flags: <defaults>
</compile_context>

<pallas_src>
import jax
import jax.numpy as jnp
from jax.experimental import pallas as pl
from jax.experimental.pallas import tpu as pltpu


def _round_up(x, m):
    return ((x + m - 1) // m) * m


def harmonic_kernel(x_ref, w_ref, wshift_ref, b_ref, o_ref):
    # x_ref:      (TN, D)  native row-major input tile
    # w_ref:      (D, D)   weight matrix, consumed untransposed (y^T = W @ x^T - W@shift)
    # wshift_ref: (D, 1)   precomputed (W @ shift) column, f32
    # b_ref:      (1, 1)   scalar bias in SMEM, f32
    # o_ref:      (1, TN)  lane-dense per-row harmonic energy
    xT = jnp.transpose(x_ref[...])                                # (D, TN)  XLU, hidden under DMA
    y = jnp.dot(w_ref[...], xT,                                   # (D, TN)  MXU, f32 accum
                preferred_element_type=jnp.float32)
    y = y - wshift_ref[...]                                       # W (x - shift)^T, exact in f32
    s = jnp.sum(y * y, axis=0, keepdims=True)                     # (1, TN)  per-lane sublane reduce
    o_ref[...] = (s + b_ref[0, 0]).astype(o_ref.dtype)


def harmonic_forward(x, weight, shift, bias, *, tile_n=8192):
    """x: (N, D), weight: (D, D), shift: (D,), bias: (1,) or None -> (N, 1)."""
    N, D = x.shape
    compute_dtype = x.dtype

    # Lane-multiple tile, never bigger than (rounded-up) N.  Default 8192 rows:
    # (8192, 32) f32 input block = 1 MiB; double-buffered = 2 MiB -> fits v5e's
    # 16 MiB scoped VMEM with room for in-kernel temporaries.  On v7x this keeps
    # >= 2 grid steps for N >= 16 K so both TensorCores get work.
    tile_n = max(128, min(_round_up(tile_n, 128), _round_up(N, 128)))
    n_tiles = pl.cdiv(N, tile_n)

    # Hoist all parameter prep out of the kernel; fold shift into the matmul.
    w = weight.astype(compute_dtype)                                        # (D, D)
    w_shift = (weight.astype(jnp.float32)
               @ shift.astype(jnp.float32)).reshape(D, 1)                   # (D, 1) f32
    if bias is None:
        bias2d = jnp.zeros((1, 1), dtype=jnp.float32)
    else:
        bias2d = bias.reshape(1, 1).astype(jnp.float32)

    itemsize = jnp.dtype(compute_dtype).itemsize
    cost = pl.CostEstimate(
        flops=2 * N * D * D,
        transcendentals=0,
        bytes_accessed=N * D * itemsize + N * itemsize + D * D * itemsize,
    )

    out_row = pl.pallas_call(
        harmonic_kernel,
        out_shape=jax.ShapeDtypeStruct((1, N), compute_dtype),
        grid_spec=pltpu.PrefetchScalarGridSpec(
            num_scalar_prefetch=0,
            grid=(n_tiles,),
            in_specs=[
                pl.BlockSpec((tile_n, D), lambda i: (i, 0)),            # x tile, native layout
                pl.BlockSpec((D, D), lambda i: (0, 0)),                 # weight (replicated)
                pl.BlockSpec((D, 1), lambda i: (0, 0)),                 # W @ shift (replicated)
                pl.BlockSpec(memory_space=pltpu.MemorySpace.SMEM),      # bias scalar
            ],
            out_specs=pl.BlockSpec((1, tile_n), lambda i: (0, i)),      # lane-dense output row
        ),
        compiler_params=pltpu.CompilerParams(
            dimension_semantics=("parallel",),
        ),
        cost_estimate=cost,
    )(x, w, w_shift, bias2d)

    # Cheap layout plumbing back to the module's (N, 1) shape (N floats).
    return out_row.reshape(N, 1)


def harmonic_reference(x, weight, shift, bias):
    centered = x.astype(jnp.float32) - shift[None, :].astype(jnp.float32)
    y = centered @ weight.astype(jnp.float32).T
    out = jnp.sum(y * y, axis=1, keepdims=True)
    if bias is not None:
        out = out + bias[None, :].astype(jnp.float32)
    return out.astype(x.dtype)


if __name__ == "__main__":
    # Shapes consistent with HarmonicModule(in_features=D): x (N, D), weight (D, D),
    # shift (D,), bias (1,).
    N, D = 2048, 32
    key = jax.random.PRNGKey(0)
    kx, kw, ks, kb = jax.random.split(key, 4)

    x = jax.random.normal(kx, (N, D), dtype=jnp.float32)
    weight = jax.random.normal(kw, (D, D), dtype=jnp.float32) * 0.1
    shift = jax.random.normal(ks, (D,), dtype=jnp.float32) * 0.1
    bias = jax.random.normal(kb, (1,), dtype=jnp.float32) * 0.1

    # Default (single large tile for this small N).
    out = harmonic_forward(x, weight, shift, bias)
    out = jax.block_until_ready(out)
    ref = harmonic_reference(x, weight, shift, bias)
    assert out.shape == (N, 1), out.shape
    assert jnp.allclose(out, ref, atol=1e-3, rtol=1e-3), "mismatch vs reference"

    # Ragged N + multi-step grid path (masked tail block, no padding copy).
    N2 = 1000
    out2 = harmonic_forward(x[:N2], weight, shift, bias, tile_n=256)
    out2 = jax.block_until_ready(out2)
    ref2 = harmonic_reference(x[:N2], weight, shift, bias)
    assert out2.shape == (N2, 1), out2.shape
    assert jnp.allclose(out2, ref2, atol=1e-3, rtol=1e-3), "mismatch vs reference (ragged)"

    # No-bias path.
    out3 = harmonic_forward(x, weight, shift, None)
    out3 = jax.block_until_ready(out3)
    ref3 = harmonic_reference(x, weight, shift, None)
    assert jnp.allclose(out3, ref3, atol=1e-3, rtol=1e-3), "mismatch vs reference (no bias)"

    print("KERNEL_OK")
</pallas_src>

<mosaic_0001>
module attributes {stable_mosaic.version = 11 : i64} {
  func.func @harmonic_kernel(%arg0: i32, %arg1: memref<2048x32xf32, #tpu.memory_space<vmem>>, %arg2: memref<32x32xf32, #tpu.memory_space<vmem>>, %arg3: memref<32x1xf32, #tpu.memory_space<vmem>>, %arg4: memref<1x1xf32, #tpu.memory_space<smem>>, %arg5: memref<1x2048xf32, #tpu.memory_space<vmem>>) attributes {dimension_semantics = [#tpu.dimension_semantics<parallel>], iteration_bounds = array<i64: 1>, scalar_prefetch = 0 : i64, scratch_operands = 0 : i64, tpu.core_type = #tpu.core_type<tc>, window_params = [{transform_indices = @transform_0, window_bounds = array<i64: 2048, 32>}, {pipeline_mode = #tpu.pipeline_mode<synchronous>, transform_indices = @transform_1, window_bounds = array<i64: 32, 32>}, {pipeline_mode = #tpu.pipeline_mode<synchronous>, transform_indices = @transform_2, window_bounds = array<i64: 32, 1>}, {transform_indices = @transform_3, window_bounds = array<i64: 1, 1>}, {transform_indices = @transform_4, window_bounds = array<i64: 1, 2048>}]} {
    %c0 = arith.constant 0 : index
    %c0_0 = arith.constant 0 : index
    %0 = vector.load %arg1[%c0, %c0_0] : memref<2048x32xf32, #tpu.memory_space<vmem>>, vector<2048x32xf32>
    %1 = tpu.transpose %0, [1, 0] : vector<2048x32xf32> -> vector<32x2048xf32>
    %c0_1 = arith.constant 0 : index
    %c0_2 = arith.constant 0 : index
    %2 = vector.load %arg2[%c0_1, %c0_2] : memref<32x32xf32, #tpu.memory_space<vmem>>, vector<32x32xf32>
    %cst = arith.constant dense<0.000000e+00> : vector<32x2048xf32>
    %3 = tpu.matmul %2, %1, %cst {dimension_numbers = #tpu.dot_dimension_numbers<[1], [0], [0], [1], [0, 0, 1, 1], [], []>} : vector<32x32xf32>, vector<32x2048xf32>, vector<32x2048xf32> -> vector<32x2048xf32>
    %c0_3 = arith.constant 0 : index
    %c0_4 = arith.constant 0 : index
    %4 = vector.load %arg3[%c0_3, %c0_4] : memref<32x1xf32, #tpu.memory_space<vmem>>, vector<32x1xf32>
    %5 = vector.broadcast %4 : vector<32x1xf32> to vector<32x2048xf32>
    %6 = arith.subf %3, %5 : vector<32x2048xf32>
    %7 = arith.mulf %6, %6 : vector<32x2048xf32>
    %cst_5 = arith.constant dense<0.000000e+00> : vector<2048xf32>
    %8 = vector.multi_reduction <add>, %7, %cst_5 [0] : vector<32x2048xf32> to vector<2048xf32>
    %9 = vector.shape_cast %8 : vector<2048xf32> to vector<1x2048xf32>
    %c0_6 = arith.constant 0 : index
    %c0_7 = arith.constant 0 : index
    %10 = memref.load %arg4[%c0_6, %c0_7] : memref<1x1xf32, #tpu.memory_space<smem>>
    %11 = vector.broadcast %10 : f32 to vector<1x2048xf32>
    %12 = arith.addf %9, %11 : vector<1x2048xf32>
    %c0_8 = arith.constant 0 : index
    %c0_9 = arith.constant 0 : index
    %13 = vector.load %arg5[%c0_8, %c0_9] : memref<1x2048xf32, #tpu.memory_space<vmem>>, vector<1x2048xf32>
    tpu.vector_store %arg5[%c0_8, %c0_9], %12 {strides = array<i32>} : memref<1x2048xf32, #tpu.memory_space<vmem>>, vector<1x2048xf32>,
    return
  }
  func.func @transform_0(%arg0: i32) -> (i32, i32) {
    %c0_i32 = arith.constant 0 : i32
    %c0_i32_0 = arith.constant 0 : i32
    return %arg0, %c0_i32 : i32, i32
  }
  func.func @transform_1(%arg0: i32) -> (i32, i32) {
    %c0_i32 = arith.constant 0 : i32
    %c0_i32_0 = arith.constant 0 : i32
    %c0_i32_1 = arith.constant 0 : i32
    return %c0_i32, %c0_i32_0 : i32, i32
  }
  func.func @transform_2(%arg0: i32) -> (i32, i32) {
    %c0_i32 = arith.constant 0 : i32
    %c0_i32_0 = arith.constant 0 : i32
    %c0_i32_1 = arith.constant 0 : i32
    return %c0_i32, %c0_i32_0 : i32, i32
  }
  func.func @transform_3(%arg0: i32) -> (i32, i32) {
    %c0_i32 = arith.constant 0 : i32
    %c0_i32_0 = arith.constant 0 : i32
    %c0_i32_1 = arith.constant 0 : i32
    return %c0_i32, %c0_i32_0 : i32, i32
  }
  func.func @transform_4(%arg0: i32) -> (i32, i32) {
    %c0_i32 = arith.constant 0 : i32
    %c0_i32_0 = arith.constant 0 : i32
    return %c0_i32, %arg0 : i32, i32
  }
}

</mosaic_0001>

<bundles_post_ra>
// kernel: tpu_custom_call.1
= control target key start
LH: loop header
LB: loop body
LE: loop exit
PB: predicated region body
PF: predicated region fallthrough
CT: control target
= control target key end

     0   :  { %vm279_vm0 = vcmask 261120   ;;  %v3240_v52 = vmov 0   ;;  %s4596_s0 = inlined_call_operand.vmem [shape: f32[2048,32], index: 0, kind: input, shape index: {}]   ;;  %s4597_s1 = inlined_call_operand.vmem [shape: f32[32,32], index: 1, kind: input, shape index: {}]   ;;  %s4598_s2 = inlined_call_operand.vmem [shape: f32[32,1], index: 2, kind: input, shape index: {}]   ;;  %s4599_s3 = inlined_call_operand.<no memory space> [shape: f32[1,1], index: 3, kind: input, shape index: {}]   ;;  %s4600_s4 = inlined_call_operand.hbm [shape: f32[1,2048], index: 4, kind: output, shape index: {}]  }
   0x1   :  { %v35_v0 = vld [vmem:[%s4596_s0 + $0x80] sm:$0xff]  ;;  %v36_v1 = vld [vmem:[%s4596_s0 + $0x88] sm:$0xff]  ;;  %vm3279_vm1 = vmpackc.low %vm279_vm0, %vm279_vm0  ;;  %3213 = vset.pattern.permute.xlu0 %v3240_v52  ;;  %3214 = vset.pattern.permute.xlu1 %v3240_v52 }
   0x2   :  { %v67_v2 = vld [vmem:[%s4596_s0 + $0x180] sm:$0xff]  ;;  %v2826_v3 = vpack.c.bf16 %v36_v1, %v35_v0  ;;  %v68_v5 = vld [vmem:[%s4596_s0 + $0x188] sm:$0xff]  ;;  %v37_v13 = vld [vmem:[%s4596_s0 + $0x90] sm:$0xff] }
   0x3   :  { %v19_v6 = vld [vmem:[%s4596_s0] sm:$0xff]  ;;  %v2874_v7 = vpack.c.bf16 %v68_v5, %v67_v2  ;;  %v20_v8 = vld [vmem:[%s4596_s0 + $0x8] sm:$0xff]  ;;  %v38_v14 = vld [vmem:[%s4596_s0 + $0x98] sm:$0xff] }
   0x4   :  { %v51_v9 = vld [vmem:[%s4596_s0 + $0x100] sm:$0xff]  ;;  %v52_v10 = vld [vmem:[%s4596_s0 + $0x108] sm:$0xff]  ;;  %2828 = vmatprep.subr.msk.bf16.mxu0 %vm3279_vm1, %v2826_v3  ;;  %v2829_v11 = vpack.c.bf16 %v20_v8, %v19_v6  ;;  %v69_v15 = vld [vmem:[%s4596_s0 + $0x190] sm:$0xff]  ;;  %v2832_v16 = vpack.c.bf16 %v38_v14, %v37_v13 }
   0x5   :  { %v2877_v12 = vpack.c.bf16 %v52_v10, %v51_v9  ;;  %2876 = vmatprep.subr.msk.bf16.mxu1 %vm3279_vm1, %v2874_v7  ;;  %v70_v17 = vld [vmem:[%s4596_s0 + $0x198] sm:$0xff]  ;;  %v21_v19 = vld [vmem:[%s4596_s0 + $0x10] sm:$0xff]  ;;  %v39_v23 = vld [vmem:[%s4596_s0 + $0xa0] sm:$0xff] }
   0x6   :  { %2831 = vmatpush3.bf16.xpose.msk.msra.mxu0 %vm3279_vm1, %v2829_v11  ;;  %v2880_v18 = vpack.c.bf16 %v70_v17, %v69_v15  ;;  %v22_v20 = vld [vmem:[%s4596_s0 + $0x18] sm:$0xff]  ;;  %v53_v21 = vld [vmem:[%s4596_s0 + $0x110] sm:$0xff]  ;;  %v40_v24 = vld [vmem:[%s4596_s0 + $0xa8] sm:$0xff] }
   0x7   :  { %2879 = vmatpush3.bf16.xpose.msk.msra.mxu1 %vm3279_vm1, %v2877_v12  ;;  %2834 = vmatprep.subr.msk.bf16.mxu0 %vm3279_vm1, %v2832_v16  ;;  %v54_v22 = vld [vmem:[%s4596_s0 + $0x118] sm:$0xff]  ;;  %v71_v25 = vld [vmem:[%s4596_s0 + $0x1a0] sm:$0xff]  ;;  %v72_v26 = vld [vmem:[%s4596_s0 + $0x1a8] sm:$0xff]  ;;  %v2835_v27 = vpack.c.bf16 %v22_v20, %v21_v19  ;;  %v2838_v29 = vpack.c.bf16 %v40_v24, %v39_v23 }
   0x8   :  { %2882 = vmatprep.subr.msk.bf16.mxu1 %vm3279_vm1, %v2880_v18  ;;  %v2883_v28 = vpack.c.bf16 %v54_v22, %v53_v21  ;;  %v2886_v30 = vpack.c.bf16 %v72_v26, %v71_v25  ;;  %v23_v31 = vld [vmem:[%s4596_s0 + $0x20] sm:$0xff]  ;;  %v24_v32 = vld [vmem:[%s4596_s0 + $0x28] sm:$0xff]  ;;  %v41_v35 = vld [vmem:[%s4596_s0 + $0xb0] sm:$0xff] }
   0x9   :  { %v55_v33 = vld [vmem:[%s4596_s0 + $0x120] sm:$0xff]  ;;  %v56_v34 = vld [vmem:[%s4596_s0 + $0x128] sm:$0xff]  ;;  %v42_v36 = vld [vmem:[%s4596_s0 + $0xb8] sm:$0xff]  ;;  %v2841_v39 = vpack.c.bf16 %v24_v32, %v23_v31 }
   0xa   :  { %v73_v37 = vld [vmem:[%s4596_s0 + $0x1b0] sm:$0xff]  ;;  %v74_v38 = vld [vmem:[%s4596_s0 + $0x1b8] sm:$0xff]  ;;  %v2889_v40 = vpack.c.bf16 %v56_v34, %v55_v33  ;;  %v2844_v41 = vpack.c.bf16 %v42_v36, %v41_v35  ;;  %v3391_v45 = vld [vmem:[%s4597_s1] sm:$0xff] }
   0xb   :  { %v2892_v42 = vpack.c.bf16 %v74_v38, %v73_v37  ;;  %v25_v43 = vld [vmem:[%s4596_s0 + $0x30] sm:$0xff]  ;;  %v26_v44 = vld [vmem:[%s4596_s0 + $0x38] sm:$0xff]  ;;  %v43_v48 = vld [vmem:[%s4596_s0 + $0xc0] sm:$0xff]  ;;  %2538 = vmatprep.mubr.msk.f32.mxu0 %vm279_vm0, %v3391_v45  ;;  %2578 = vmatprep.mubr.msk.f32.mxu1 %vm279_vm0, %v3391_v45 }
   0xc   :  { %v57_v46 = vld [vmem:[%s4596_s0 + $0x130] sm:$0xff]  ;;  %v58_v47 = vld [vmem:[%s4596_s0 + $0x138] sm:$0xff]  ;;  %v44_v49 = vld [vmem:[%s4596_s0 + $0xc8] sm:$0xff]  ;;  %v2847_v53 = vpack.c.bf16 %v26_v44, %v25_v43 }
   0xd   :  { %v75_v50 = vld [vmem:[%s4596_s0 + $0x1c0] sm:$0xff]  ;;  %v76_v51 = vld [vmem:[%s4596_s0 + $0x1c8] sm:$0xff]  ;;  %v2895_v54 = vpack.c.bf16 %v58_v47, %v57_v46  ;;  %v2850_v55 = vpack.c.bf16 %v44_v49, %v43_v48  ;;  %v45_v61 = vld [vmem:[%s4596_s0 + $0xd0] sm:$0xff] }
   0xe   :  { %2837 = vmatpush3.bf16.xpose.msk.msra.mxu0 %vm3279_vm1, %v2835_v27  ;;  %v2898_v56 = vpack.c.bf16 %v76_v51, %v75_v50  ;;  %v27_v57 = vld [vmem:[%s4596_s0 + $0x40] sm:$0xff]  ;;  %v28_v58 = vld [vmem:[%s4596_s0 + $0x48] sm:$0xff]  ;;  %v46_v62 = vld [vmem:[%s4596_s0 + $0xd8] sm:$0xff] }
   0xf   :  { %2885 = vmatpush3.bf16.xpose.msk.msra.mxu1 %vm3279_vm1, %v2883_v28  ;;  %2840 = vmatprep.subr.msk.bf16.mxu0 %vm3279_vm1, %v2838_v29  ;;  %v59_v59 = vld [vmem:[%s4596_s0 + $0x140] sm:$0xff]  ;;  %v60_v60 = vld [vmem:[%s4596_s0 + $0x148] sm:$0xff]  ;;  %v77_v63 = vld [vmem:[%s4596_s0 + $0x1d0] sm:$0xff]  ;;  %v2853_v1 = vpack.c.bf16 %v28_v58, %v27_v57  ;;  %v2856_v3 = vpack.c.bf16 %v46_v62, %v45_v61 }
  0x10   :  { %2888 = vmatprep.subr.msk.bf16.mxu1 %vm3279_vm1, %v2886_v30  ;;  %v78_v0 = vld [vmem:[%s4596_s0 + $0x1d8] sm:$0xff]  ;;  %v2901_v2 = vpack.c.bf16 %v60_v60, %v59_v59  ;;  %v29_v6 = vld [vmem:[%s4596_s0 + $0x50] sm:$0xff]  ;;  %v47_v10 = vld [vmem:[%s4596_s0 + $0xe0] sm:$0xff] }
  0x11   :  { %v2904_v5 = vpack.c.bf16 %v78_v0, %v77_v63  ;;  %v30_v7 = vld [vmem:[%s4596_s0 + $0x58] sm:$0xff]  ;;  %v61_v8 = vld [vmem:[%s4596_s0 + $0x150] sm:$0xff]  ;;  %v48_v11 = vld [vmem:[%s4596_s0 + $0xe8] sm:$0xff] }
  0x12   :  { %v62_v9 = vld [vmem:[%s4596_s0 + $0x158] sm:$0xff]  ;;  %v79_v12 = vld [vmem:[%s4596_s0 + $0x1e0] sm:$0xff]  ;;  %v80_v13 = vld [vmem:[%s4596_s0 + $0x1e8] sm:$0xff]  ;;  %v2859_v14 = vpack.c.bf16 %v30_v7, %v29_v6  ;;  %v2862_v16 = vpack.c.bf16 %v48_v11, %v47_v10 }
  0x13   :  { %v2907_v15 = vpack.c.bf16 %v62_v9, %v61_v8  ;;  %v2910_v17 = vpack.c.bf16 %v80_v13, %v79_v12  ;;  %v31_v18 = vld [vmem:[%s4596_s0 + $0x60] sm:$0xff]  ;;  %v32_v19 = vld [vmem:[%s4596_s0 + $0x68] sm:$0xff]  ;;  %v49_v22 = vld [vmem:[%s4596_s0 + $0xf0] sm:$0xff] }
  0x14   :  { %v63_v20 = vld [vmem:[%s4596_s0 + $0x160] sm:$0xff]  ;;  %v64_v21 = vld [vmem:[%s4596_s0 + $0x168] sm:$0xff]  ;;  %v50_v23 = vld [vmem:[%s4596_s0 + $0xf8] sm:$0xff]  ;;  %v2865_v26 = vpack.c.bf16 %v32_v19, %v31_v18 }
  0x15   :  { %v81_v24 = vld [vmem:[%s4596_s0 + $0x1f0] sm:$0xff]  ;;  %v82_v25 = vld [vmem:[%s4596_s0 + $0x1f8] sm:$0xff]  ;;  %v2913_v27 = vpack.c.bf16 %v64_v21, %v63_v20  ;;  %v2868_v28 = vpack.c.bf16 %v50_v23, %v49_v22  ;;  %v1772_v30 = vld [vmem:[%s4598_s2] sm:$0xff] }
  0x16   :  { %2843 = vmatpush3.bf16.xpose.msk.msra.mxu0 %vm3279_vm1, %v2841_v39  ;;  %v2916_v29 = vpack.c.bf16 %v82_v25, %v81_v24  ;;  %v33_v31 = vld [vmem:[%s4596_s0 + $0x70] sm:$0xff]  ;;  %v34_v32 = vld [vmem:[%s4596_s0 + $0x78] sm:$0xff]  ;;  %v99_v35 = vld [vmem:[%s4596_s0 + $0x280] sm:$0xff]  ;;  %1778 = vperm.xlu0 %3213, %v1772_v30  }
  0x17   :  { %2891 = vmatpush3.bf16.xpose.msk.msra.mxu1 %vm3279_vm1, %v2889_v40  ;;  %2846 = vmatprep.subr.msk.bf16.mxu0 %vm3279_vm1, %v2844_v41  ;;  %v65_v33 = vld [vmem:[%s4596_s0 + $0x170] sm:$0xff]  ;;  %v66_v34 = vld [vmem:[%s4596_s0 + $0x178] sm:$0xff]  ;;  %v100_v36 = vld [vmem:[%s4596_s0 + $0x288] sm:$0xff]  ;;  %v2871_v41 = vpack.c.bf16 %v34_v32, %v33_v31 }
  0x18   :  { %2894 = vmatprep.subr.msk.bf16.mxu1 %vm3279_vm1, %v2892_v42  ;;  %v131_v37 = vld [vmem:[%s4596_s0 + $0x380] sm:$0xff]  ;;  %v132_v38 = vld [vmem:[%s4596_s0 + $0x388] sm:$0xff]  ;;  %v1774_v39 = vld [vmem:[%s4598_s2 + $0x10] sm:$0xff]  ;;  %v2919_v42 = vpack.c.bf16 %v66_v34, %v65_v33  ;;  %v2922_v44 = vpack.c.bf16 %v100_v36, %v99_v35 }
  0x19   :  { %v1773_v40 = vld [vmem:[%s4598_s2 + $0x8] sm:$0xff]  ;;  %1788 = vperm.xlu1 %3214, %v1774_v39   ;;  %v1775_v43 = vld [vmem:[%s4598_s2 + $0x18] sm:$0xff]  ;;  %v2970_v46 = vpack.c.bf16 %v132_v38, %v131_v37  ;;  %v83_v47 = vld [vmem:[%s4596_s0 + $0x200] sm:$0xff] }
  0x1a   :  { %1783 = vperm.xlu0 %3213, %v1773_v40   ;;  %v84_v48 = vld [vmem:[%s4596_s0 + $0x208] sm:$0xff]  ;;  %v115_v49 = vld [vmem:[%s4596_s0 + $0x300] sm:$0xff]  ;;  %v101_v51 = vld [vmem:[%s4596_s0 + $0x290] sm:$0xff] }
  0x1b   :  { %v116_v50 = vld [vmem:[%s4596_s0 + $0x308] sm:$0xff]  ;;  %v102_v52 = vld [vmem:[%s4596_s0 + $0x298] sm:$0xff]  ;;  %v3607_v60 = vld [vmem:[%s4597_s1 + $0x10] sm:$0xff] }
  0x1c   :  { %v3594_v57 = vld [vmem:[%s4597_s1 + $0x8] sm:$0xff]  ;;  %v2928_v58 = vpack.c.bf16 %v102_v52, %v101_v51  ;;  %v85_v61 = vld [vmem:[%s4596_s0 + $0x210] sm:$0xff] }
  0x1d   :  { %1793 = vperm.xlu1 %3214, %v1775_v43  }
  0x1e   :  { %2849 = vmatpush3.bf16.xpose.msk.msra.mxu0 %vm3279_vm1, %v2847_v53  ;;  %v133_v53 = vld [vmem:[%s4596_s0 + $0x390] sm:$0xff] }
  0x1f   :  { %2897 = vmatpush3.bf16.xpose.msk.msra.mxu1 %vm3279_vm1, %v2895_v54  ;;  %2852 = vmatprep.subr.msk.bf16.mxu0 %vm3279_vm1, %v2850_v55  ;;  %v134_v54 = vld [vmem:[%s4596_s0 + $0x398] sm:$0xff]  ;;  %v2925_v55 = vpack.c.bf16 %v84_v48, %v83_v47 }
  0x20   :  { %2900 = vmatprep.subr.msk.bf16.mxu1 %vm3279_vm1, %v2898_v56  ;;  %v2973_v56 = vpack.c.bf16 %v116_v50, %v115_v49  ;;  %v2976_v59 = vpack.c.bf16 %v134_v54, %v133_v53 }
  0x26   :  { %2855 = vmatpush3.bf16.xpose.msk.msra.mxu0 %vm3279_vm1, %v2853_v1 }
  0x27   :  { %2903 = vmatpush3.bf16.xpose.msk.msra.mxu1 %vm3279_vm1, %v2901_v2  ;;  %2858 = vmatprep.subr.msk.bf16.mxu0 %vm3279_vm1, %v2856_v3 }
  0x28   :  { %2906 = vmatprep.subr.msk.bf16.mxu1 %vm3279_vm1, %v2904_v5 }
  0x2e   :  { %2861 = vmatpush3.bf16.xpose.msk.msra.mxu0 %vm3279_vm1, %v2859_v14 }
  0x2f   :  { %2909 = vmatpush3.bf16.xpose.msk.msra.mxu1 %vm3279_vm1, %v2907_v15  ;;  %2864 = vmatprep.subr.msk.bf16.mxu0 %vm3279_vm1, %v2862_v16 }
  0x30   :  { %2912 = vmatprep.subr.msk.bf16.mxu1 %vm3279_vm1, %v2910_v17 }
  0x36   :  { %2867 = vmatpush3.bf16.xpose.msk.msra.mxu0 %vm3279_vm1, %v2865_v26 }
  0x37   :  { %2915 = vmatpush3.bf16.xpose.msk.msra.mxu1 %vm3279_vm1, %v2913_v27  ;;  %2870 = vmatprep.subr.msk.bf16.mxu0 %vm3279_vm1, %v2868_v28 }
  0x38   :  { %2918 = vmatprep.subr.msk.bf16.mxu1 %vm3279_vm1, %v2916_v29 }
  0x3e   :  { %2873 = vmatpush3.bf16.xpose.msk.msra.mxu0 %vm3279_vm1, %v2871_v41 }
  0x3f   :  { %2921 = vmatpush3.bf16.xpose.msk.msra.mxu1 %vm3279_vm1, %v2919_v42  ;;  %2924 = vmatprep.subr.msk.bf16.mxu0 %vm3279_vm1, %v2922_v44 }
  0x40   :  { %2972 = vmatprep.subr.msk.bf16.mxu1 %vm3279_vm1, %v2970_v46 }
  0x45   :  { %2539 = vmatmul.mubr.msk.f32.vlgmr.msra.gmra.mrb[0].mxu0 %vm279_vm0, %v3391_v45 }
  0x46   :  { %2579 = vmatmul.mubr.msk.f32.vlgmr.msra.gmra.mrb[0].mxu1 %vm279_vm0, %v3391_v45  ;;  %2927 = vmatpush3.bf16.xpose.msk.msra.mxu0 %vm3279_vm1, %v2925_v55 }
  0x47   :  { %2975 = vmatpush3.bf16.xpose.msk.msra.mxu1 %vm3279_vm1, %v2973_v56 }
  0x48   :  { %10 = vsyncpa [#allocation4], 0  ;;  %2540 = vmatprep.mubr.msk.f32.mxu0 %vm279_vm0, %v3594_v57  ;;  %2580 = vmatprep.mubr.msk.f32.mxu1 %vm279_vm0, %v3594_v57  ;;  %v86_v62 = vld [vmem:[%s4596_s0 + $0x218] sm:$0xff]  ;;  %v117_v63 = vld [vmem:[%s4596_s0 + $0x310] sm:$0xff] }
  0x49   :  { %v118_v0 = vld [vmem:[%s4596_s0 + $0x318] sm:$0xff]  ;;  %2930 = vmatprep.subr.msk.bf16.mxu0 %vm3279_vm1, %v2928_v58  ;;  %2978 = vmatprep.subr.msk.bf16.mxu1 %vm3279_vm1, %v2976_v59  ;;  %v103_v1 = vld [vmem:[%s4596_s0 + $0x2a0] sm:$0xff]  ;;  %v104_v2 = vld [vmem:[%s4596_s0 + $0x2a8] sm:$0xff]  ;;  %v2931_v6 = vpack.c.bf16 %v86_v62, %v85_v61 }
  0x4a   :  { %2541 = vmatmul.mubr.msk.f32.gmra.mrb[2].mxu0 %vm279_vm0, %v3594_v57  ;;  %2581 = vmatmul.mubr.msk.f32.gmra.mrb[2].mxu1 %vm279_vm0, %v3594_v57  ;;  %v135_v3 = vld [vmem:[%s4596_s0 + $0x3a0] sm:$0xff]  ;;  %v136_v5 = vld [vmem:[%s4596_s0 + $0x3a8] sm:$0xff]  ;;  %v2979_v7 = vpack.c.bf16 %v118_v0, %v117_v63  ;;  %v3652_v8 = vld [vmem:[%s4597_s1 + $0x18] sm:$0xff]  ;;  %v2934_v9 = vpack.c.bf16 %v104_v2, %v103_v1 }
  0x4b   :  { %2542 = vmatprep.mubr.msk.f32.mxu0 %vm279_vm0, %v3607_v60  ;;  %2582 = vmatprep.mubr.msk.f32.mxu1 %vm279_vm0, %v3607_v60  ;;  %v2982_v10 = vpack.c.bf16 %v136_v5, %v135_v3  ;;  %v87_v11 = vld [vmem:[%s4596_s0 + $0x220] sm:$0xff]  ;;  %v88_v12 = vld [vmem:[%s4596_s0 + $0x228] sm:$0xff]  ;;  %v105_v15 = vld [vmem:[%s4596_s0 + $0x2b0] sm:$0xff] }
  0x4c   :  { %v119_v13 = vld [vmem:[%s4596_s0 + $0x320] sm:$0xff]  ;;  %v120_v14 = vld [vmem:[%s4596_s0 + $0x328] sm:$0xff]  ;;  %v106_v16 = vld [vmem:[%s4596_s0 + $0x2b8] sm:$0xff]  ;;  %v2937_v19 = vpack.c.bf16 %v88_v12, %v87_v11 }
  0x4d   :  { %v137_v17 = vld [vmem:[%s4596_s0 + $0x3b0] sm:$0xff]  ;;  %v138_v18 = vld [vmem:[%s4596_s0 + $0x3b8] sm:$0xff]  ;;  %v2985_v20 = vpack.c.bf16 %v120_v14, %v119_v13  ;;  %v2940_v21 = vpack.c.bf16 %v106_v16, %v105_v15  ;;  %v107_v27 = vld [vmem:[%s4596_s0 + $0x2c0] sm:$0xff] }
  0x4e   :  { %2543 = vmatmul.mubr.msk.f32.gmra.mrb[4].mxu0 %vm279_vm0, %v3607_v60  ;;  %2583 = vmatmul.mubr.msk.f32.gmra.mrb[4].mxu1 %vm279_vm0, %v3607_v60  ;;  %v2988_v22 = vpack.c.bf16 %v138_v18, %v137_v17  ;;  %v89_v23 = vld [vmem:[%s4596_s0 + $0x230] sm:$0xff]  ;;  %v90_v24 = vld [vmem:[%s4596_s0 + $0x238] sm:$0xff]  ;;  %v108_v28 = vld [vmem:[%s4596_s0 + $0x2c8] sm:$0xff] }
  0x4f   :  { %2933 = vmatpush3.bf16.xpose.msk.msra.mxu0 %vm3279_vm1, %v2931_v6  ;;  %2981 = vmatpush3.bf16.xpose.msk.msra.mxu1 %vm3279_vm1, %v2979_v7  ;;  %v121_v25 = vld [vmem:[%s4596_s0 + $0x330] sm:$0xff]  ;;  %v122_v26 = vld [vmem:[%s4596_s0 + $0x338] sm:$0xff]  ;;  %v139_v29 = vld [vmem:[%s4596_s0 + $0x3c0] sm:$0xff]  ;;  %v2943_v31 = vpack.c.bf16 %v90_v24, %v89_v23  ;;  %v2946_v33 = vpack.c.bf16 %v108_v28, %v107_v27 }
  0x50   :  { %2544 = vmatprep.mubr.msk.f32.mxu0 %vm279_vm0, %v3652_v8  ;;  %2584 = vmatprep.mubr.msk.f32.mxu1 %vm279_vm0, %v3652_v8  ;;  %v140_v30 = vld [vmem:[%s4596_s0 + $0x3c8] sm:$0xff]  ;;  %v2991_v32 = vpack.c.bf16 %v122_v26, %v121_v25  ;;  %v91_v35 = vld [vmem:[%s4596_s0 + $0x240] sm:$0xff]  ;;  %v109_v39 = vld [vmem:[%s4596_s0 + $0x2d0] sm:$0xff] }
  0x51   :  { %2936 = vmatprep.subr.msk.bf16.mxu0 %vm3279_vm1, %v2934_v9  ;;  %2984 = vmatprep.subr.msk.bf16.mxu1 %vm3279_vm1, %v2982_v10  ;;  %v2994_v34 = vpack.c.bf16 %v140_v30, %v139_v29  ;;  %v92_v36 = vld [vmem:[%s4596_s0 + $0x248] sm:$0xff]  ;;  %v123_v37 = vld [vmem:[%s4596_s0 + $0x340] sm:$0xff]  ;;  %v110_v40 = vld [vmem:[%s4596_s0 + $0x2d8] sm:$0xff] }
  0x52   :  { %2545 = vmatmul.mubr.msk.f32.gmra.mrb[6].mxu0 %vm279_vm0, %v3652_v8  ;;  %2585 = vmatmul.mubr.msk.f32.gmra.mrb[6].mxu1 %vm279_vm0, %v3652_v8  ;;  %v124_v38 = vld [vmem:[%s4596_s0 + $0x348] sm:$0xff]  ;;  %v141_v41 = vld [vmem:[%s4596_s0 + $0x3d0] sm:$0xff]  ;;  %v142_v42 = vld [vmem:[%s4596_s0 + $0x3d8] sm:$0xff]  ;;  %v2949_v43 = vpack.c.bf16 %v92_v36, %v91_v35  ;;  %v2952_v46 = vpack.c.bf16 %v110_v40, %v109_v39 }
  0x53   :  { %2618 = vmatprep.mubr.msk.f32.mxu0 %vm279_vm0, %v3391_v45  ;;  %2658 = vmatprep.mubr.msk.f32.mxu1 %vm279_vm0, %v3391_v45  ;;  %v2997_v44 = vpack.c.bf16 %v124_v38, %v123_v37  ;;  %v3000_v47 = vpack.c.bf16 %v142_v42, %v141_v41  ;;  %v93_v48 = vld [vmem:[%s4596_s0 + $0x250] sm:$0xff]  ;;  %v94_v49 = vld [vmem:[%s4596_s0 + $0x258] sm:$0xff]  ;;  %v111_v52 = vld [vmem:[%s4596_s0 + $0x2e0] sm:$0xff] }
  0x54   :  { %v125_v50 = vld [vmem:[%s4596_s0 + $0x350] sm:$0xff]  ;;  %v126_v51 = vld [vmem:[%s4596_s0 + $0x358] sm:$0xff]  ;;  %v112_v53 = vld [vmem:[%s4596_s0 + $0x2e8] sm:$0xff]  ;;  %v2955_v56 = vpack.c.bf16 %v94_v49, %v93_v48 }
  0x55   :  { %v143_v54 = vld [vmem:[%s4596_s0 + $0x3e0] sm:$0xff]  ;;  %v144_v55 = vld [vmem:[%s4596_s0 + $0x3e8] sm:$0xff]  ;;  %v3003_v58 = vpack.c.bf16 %v126_v51, %v125_v50  ;;  %v2958_v59 = vpack.c.bf16 %v112_v53, %v111_v52  ;;  %v113_v2 = vld [vmem:[%s4596_s0 + $0x2f0] sm:$0xff] }
  0x56   :  { %v3006_v61 = vpack.c.bf16 %v144_v55, %v143_v54  ;;  %v95_v62 = vld [vmem:[%s4596_s0 + $0x260] sm:$0xff]  ;;  %v96_v63 = vld [vmem:[%s4596_s0 + $0x268] sm:$0xff]  ;;  %v114_v3 = vld [vmem:[%s4596_s0 + $0x2f8] sm:$0xff] }
  0x57   :  { %2939 = vmatpush3.bf16.xpose.msk.msra.mxu0 %vm3279_vm1, %v2937_v19  ;;  %2987 = vmatpush3.bf16.xpose.msk.msra.mxu1 %vm3279_vm1, %v2985_v20  ;;  %v127_v0 = vld [vmem:[%s4596_s0 + $0x360] sm:$0xff]  ;;  %v128_v1 = vld [vmem:[%s4596_s0 + $0x368] sm:$0xff]  ;;  %v145_v5 = vld [vmem:[%s4596_s0 + $0x3f0] sm:$0xff]  ;;  %v2961_v7 = vpack.c.bf16 %v96_v63, %v95_v62  ;;  %v2964_v10 = vpack.c.bf16 %v114_v3, %v113_v2 }
  0x58   :  { %2942 = vmatprep.subr.msk.bf16.mxu0 %vm3279_vm1, %v2940_v21  ;;  %2990 = vmatprep.subr.msk.bf16.mxu1 %vm3279_vm1, %v2988_v22  ;;  %v146_v6 = vld [vmem:[%s4596_s0 + $0x3f8] sm:$0xff]  ;;  %v3009_v9 = vpack.c.bf16 %v128_v1, %v127_v0  ;;  %v97_v12 = vld [vmem:[%s4596_s0 + $0x270] sm:$0xff]  ;;  %v163_v16 = vld [vmem:[%s4596_s0 + $0x480] sm:$0xff] }
  0x59   :  { %v3012_v11 = vpack.c.bf16 %v146_v6, %v145_v5  ;;  %v98_v13 = vld [vmem:[%s4596_s0 + $0x278] sm:$0xff]  ;;  %v129_v14 = vld [vmem:[%s4596_s0 + $0x370] sm:$0xff]  ;;  %v164_v17 = vld [vmem:[%s4596_s0 + $0x488] sm:$0xff] }
  0x5a   :  { %v130_v15 = vld [vmem:[%s4596_s0 + $0x378] sm:$0xff]  ;;  %v195_v18 = vld [vmem:[%s4596_s0 + $0x580] sm:$0xff]  ;;  %v196_v19 = vld [vmem:[%s4596_s0 + $0x588] sm:$0xff]  ;;  %v2967_v20 = vpack.c.bf16 %v98_v13, %v97_v12  ;;  %v3018_v22 = vpack.c.bf16 %v164_v17, %v163_v16 }
  0x5b   :  { %v3015_v21 = vpack.c.bf16 %v130_v15, %v129_v14  ;;  %v3066_v23 = vpack.c.bf16 %v196_v19, %v195_v18  ;;  %v147_v24 = vld [vmem:[%s4596_s0 + $0x400] sm:$0xff]  ;;  %v148_v25 = vld [vmem:[%s4596_s0 + $0x408] sm:$0xff]  ;;  %v165_v28 = vld [vmem:[%s4596_s0 + $0x490] sm:$0xff] }
  0x5c   :  { %v179_v26 = vld [vmem:[%s4596_s0 + $0x500] sm:$0xff]  ;;  %v180_v27 = vld [vmem:[%s4596_s0 + $0x508] sm:$0xff]  ;;  %v166_v29 = vld [vmem:[%s4596_s0 + $0x498] sm:$0xff] }
  0x5d   :  { %v197_v30 = vld [vmem:[%s4596_s0 + $0x590] sm:$0xff]  ;;  %v150_v37 = vld [vmem:[%s4596_s0 + $0x418] sm:$0xff]  ;;  %v167_v40 = vld [vmem:[%s4596_s0 + $0x4a0] sm:$0xff] }
  0x5e   :  { %v149_v36 = vld [vmem:[%s4596_s0 + $0x410] sm:$0xff]  ;;  %v182_v39 = vld [vmem:[%s4596_s0 + $0x518] sm:$0xff]  ;;  %v168_v41 = vld [vmem:[%s4596_s0 + $0x4a8] sm:$0xff] }
  0x5f   :  { %2945 = vmatpush3.bf16.xpose.msk.msra.mxu0 %vm3279_vm1, %v2943_v31  ;;  %2993 = vmatpush3.bf16.xpose.msk.msra.mxu1 %vm3279_vm1, %v2991_v32  ;;  %v198_v31 = vld [vmem:[%s4596_s0 + $0x598] sm:$0xff]  ;;  %v3021_v32 = vpack.c.bf16 %v148_v25, %v147_v24  ;;  %v181_v38 = vld [vmem:[%s4596_s0 + $0x510] sm:$0xff]  ;;  %v199_v42 = vld [vmem:[%s4596_s0 + $0x5a0] sm:$0xff] }
  0x60   :  { %2948 = vmatprep.subr.msk.bf16.mxu0 %vm3279_vm1, %v2946_v33  ;;  %2996 = vmatprep.subr.msk.bf16.mxu1 %vm3279_vm1, %v2994_v34  ;;  %v3069_v33 = vpack.c.bf16 %v180_v27, %v179_v26  ;;  %v3024_v34 = vpack.c.bf16 %v166_v29, %v165_v28  ;;  %v3072_v35 = vpack.c.bf16 %v198_v31, %v197_v30  ;;  %v151_v49 = vld [vmem:[%s4596_s0 + $0x420] sm:$0xff]  ;;  %v152_v50 = vld [vmem:[%s4596_s0 + $0x428] sm:$0xff]  ;;  %v169_v53 = vld [vmem:[%s4596_s0 + $0x4b0] sm:$0xff] }
  0x61   :  { %v183_v51 = vld [vmem:[%s4596_s0 + $0x520] sm:$0xff]  ;;  %v184_v52 = vld [vmem:[%s4596_s0 + $0x528] sm:$0xff]  ;;  %v170_v54 = vld [vmem:[%s4596_s0 + $0x4b8] sm:$0xff] }
  0x62   :  { %v201_v55 = vld [vmem:[%s4596_s0 + $0x5b0] sm:$0xff]  ;;  %v154_v0 = vld [vmem:[%s4596_s0 + $0x438] sm:$0xff]  ;;  %v171_v3 = vld [vmem:[%s4596_s0 + $0x4c0] sm:$0xff] }
  0x63   :  { %v153_v63 = vld [vmem:[%s4596_s0 + $0x430] sm:$0xff]  ;;  %v186_v2 = vld [vmem:[%s4596_s0 + $0x538] sm:$0xff]  ;;  %v172_v5 = vld [vmem:[%s4596_s0 + $0x4c8] sm:$0xff] }
  0x64   :  { %v185_v1 = vld [vmem:[%s4596_s0 + $0x530] sm:$0xff]  ;;  %v203_v6 = vld [vmem:[%s4596_s0 + $0x5c0] sm:$0xff]  ;;  %v156_v14 = vld [vmem:[%s4596_s0 + $0x448] sm:$0xff] }
  0x65   :  { %v155_v13 = vld [vmem:[%s4596_s0 + $0x440] sm:$0xff]  ;;  %v188_v16 = vld [vmem:[%s4596_s0 + $0x548] sm:$0xff]  ;;  %v173_v17 = vld [vmem:[%s4596_s0 + $0x4d0] sm:$0xff] }
  0x66   :  { %v187_v15 = vld [vmem:[%s4596_s0 + $0x540] sm:$0xff]  ;;  %v174_v18 = vld [vmem:[%s4596_s0 + $0x4d8] sm:$0xff]  ;;  %v205_v19 = vld [vmem:[%s4596_s0 + $0x5d0] sm:$0xff] }
  0x67   :  { %2951 = vmatpush3.bf16.xpose.msk.msra.mxu0 %vm3279_vm1, %v2949_v43  ;;  %2999 = vmatpush3.bf16.xpose.msk.msra.mxu1 %vm3279_vm1, %v2997_v44  ;;  %v200_v43 = vld [vmem:[%s4596_s0 + $0x5a8] sm:$0xff]  ;;  %v3027_v44 = vpack.c.bf16 %v150_v37, %v149_v36  ;;  %v157_v25 = vld [vmem:[%s4596_s0 + $0x450] sm:$0xff]  ;;  %v158_v26 = vld [vmem:[%s4596_s0 + $0x458] sm:$0xff] }
  0x68   :  { %2954 = vmatprep.subr.msk.bf16.mxu0 %vm3279_vm1, %v2952_v46  ;;  %3002 = vmatprep.subr.msk.bf16.mxu1 %vm3279_vm1, %v3000_v47  ;;  %v3075_v46 = vpack.c.bf16 %v182_v39, %v181_v38  ;;  %v3030_v47 = vpack.c.bf16 %v168_v41, %v167_v40  ;;  %v3078_v48 = vpack.c.bf16 %v200_v43, %v199_v42  ;;  %v189_v27 = vld [vmem:[%s4596_s0 + $0x550] sm:$0xff]  ;;  %v190_v28 = vld [vmem:[%s4596_s0 + $0x558] sm:$0xff]  ;;  %v175_v29 = vld [vmem:[%s4596_s0 + $0x4e0] sm:$0xff] }
  0x69   :  { %v176_v30 = vld [vmem:[%s4596_s0 + $0x4e8] sm:$0xff]  ;;  %v207_v31 = vld [vmem:[%s4596_s0 + $0x5e0] sm:$0xff]  ;;  %v177_v41 = vld [vmem:[%s4596_s0 + $0x4f0] sm:$0xff] }
  0x6a   :  { %v159_v37 = vld [vmem:[%s4596_s0 + $0x460] sm:$0xff]  ;;  %v160_v38 = vld [vmem:[%s4596_s0 + $0x468] sm:$0xff]  ;;  %v178_v42 = vld [vmem:[%s4596_s0 + $0x4f8] sm:$0xff] }
  0x6b   :  { %v191_v39 = vld [vmem:[%s4596_s0 + $0x560] sm:$0xff]  ;;  %v192_v40 = vld [vmem:[%s4596_s0 + $0x568] sm:$0xff]  ;;  %v209_v43 = vld [vmem:[%s4596_s0 + $0x5f0] sm:$0xff] }
  0x6f   :  { %2957 = vmatpush3.bf16.xpose.msk.msra.mxu0 %vm3279_vm1, %v2955_v56  ;;  %3005 = vmatpush3.bf16.xpose.msk.msra.mxu1 %vm3279_vm1, %v3003_v58  ;;  %v202_v56 = vld [vmem:[%s4596_s0 + $0x5b8] sm:$0xff]  ;;  %v3033_v58 = vpack.c.bf16 %v152_v50, %v151_v49  ;;  %v161_v50 = vld [vmem:[%s4596_s0 + $0x470] sm:$0xff] }
  0x70   :  { %2960 = vmatprep.subr.msk.bf16.mxu0 %vm3279_vm1, %v2958_v59  ;;  %3008 = vmatprep.subr.msk.bf16.mxu1 %vm3279_vm1, %v3006_v61  ;;  %v3081_v59 = vpack.c.bf16 %v184_v52, %v183_v51  ;;  %v3036_v61 = vpack.c.bf16 %v170_v54, %v169_v53  ;;  %v3084_v62 = vpack.c.bf16 %v202_v56, %v201_v55  ;;  %v162_v51 = vld [vmem:[%s4596_s0 + $0x478] sm:$0xff]  ;;  %v193_v52 = vld [vmem:[%s4596_s0 + $0x570] sm:$0xff]  ;;  %v227_v54 = vld [vmem:[%s4596_s0 + $0x680] sm:$0xff] }
  0x71   :  { %v194_v53 = vld [vmem:[%s4596_s0 + $0x578] sm:$0xff]  ;;  %v228_v55 = vld [vmem:[%s4596_s0 + $0x688] sm:$0xff]  ;;  %v259_v56 = vld [vmem:[%s4596_s0 + $0x780] sm:$0xff] }
  0x77   :  { %2963 = vmatpush3.bf16.xpose.msk.msra.mxu0 %vm3279_vm1, %v2961_v7  ;;  %3011 = vmatpush3.bf16.xpose.msk.msra.mxu1 %vm3279_vm1, %v3009_v9  ;;  %v204_v7 = vld [vmem:[%s4596_s0 + $0x5c8] sm:$0xff]  ;;  %v3039_v9 = vpack.c.bf16 %v154_v0, %v153_v63  ;;  %v211_v0 = vld [vmem:[%s4596_s0 + $0x600] sm:$0xff] }
  0x78   :  { %2966 = vmatprep.subr.msk.bf16.mxu0 %vm3279_vm1, %v2964_v10  ;;  %3014 = vmatprep.subr.msk.bf16.mxu1 %vm3279_vm1, %v3012_v11  ;;  %v3087_v10 = vpack.c.bf16 %v186_v2, %v185_v1  ;;  %v3042_v11 = vpack.c.bf16 %v172_v5, %v171_v3  ;;  %v3090_v12 = vpack.c.bf16 %v204_v7, %v203_v6  ;;  %v212_v1 = vld [vmem:[%s4596_s0 + $0x608] sm:$0xff]  ;;  %v243_v2 = vld [vmem:[%s4596_s0 + $0x700] sm:$0xff]  ;;  %v229_v5 = vld [vmem:[%s4596_s0 + $0x690] sm:$0xff] }
  0x79   :  { %v244_v3 = vld [vmem:[%s4596_s0 + $0x708] sm:$0xff]  ;;  %v230_v6 = vld [vmem:[%s4596_s0 + $0x698] sm:$0xff]  ;;  %v261_v7 = vld [vmem:[%s4596_s0 + $0x790] sm:$0xff] }
  0x7f   :  { %2969 = vmatpush3.bf16.xpose.msk.msra.mxu0 %vm3279_vm1, %v2967_v20  ;;  %3017 = vmatpush3.bf16.xpose.msk.msra.mxu1 %vm3279_vm1, %v3015_v21  ;;  %v206_v20 = vld [vmem:[%s4596_s0 + $0x5d8] sm:$0xff]  ;;  %v3045_v21 = vpack.c.bf16 %v156_v14, %v155_v13  ;;  %v213_v14 = vld [vmem:[%s4596_s0 + $0x610] sm:$0xff] }
  0x80   :  { %3020 = vmatprep.subr.msk.bf16.mxu0 %vm3279_vm1, %v3018_v22  ;;  %3068 = vmatprep.subr.msk.bf16.mxu1 %vm3279_vm1, %v3066_v23  ;;  %v3093_v22 = vpack.c.bf16 %v188_v16, %v187_v15  ;;  %v3048_v23 = vpack.c.bf16 %v174_v18, %v173_v17  ;;  %v3096_v24 = vpack.c.bf16 %v206_v20, %v205_v19  ;;  %v214_v15 = vld [vmem:[%s4596_s0 + $0x618] sm:$0xff]  ;;  %v245_v16 = vld [vmem:[%s4596_s0 + $0x710] sm:$0xff]  ;;  %v231_v18 = vld [vmem:[%s4596_s0 + $0x6a0] sm:$0xff] }
  0x81   :  { %v246_v17 = vld [vmem:[%s4596_s0 + $0x718] sm:$0xff]  ;;  %v232_v19 = vld [vmem:[%s4596_s0 + $0x6a8] sm:$0xff]  ;;  %v263_v20 = vld [vmem:[%s4596_s0 + $0x7a0] sm:$0xff] }
  0x86   :  { %2619 = vmatmul.mubr.msk.f32.vlgmr.msra.gmra.mrb[8].mxu0 %vm279_vm0, %v3391_v45  ;;  %2659 = vmatmul.mubr.msk.f32.vlgmr.msra.gmra.mrb[8].mxu1 %vm279_vm0, %v3391_v45 }
  0x87   :  { %3023 = vmatpush3.bf16.xpose.msk.msra.mxu0 %vm3279_vm1, %v3021_v32  ;;  %3071 = vmatpush3.bf16.xpose.msk.msra.mxu1 %vm3279_vm1, %v3069_v33  ;;  %v208_v32 = vld [vmem:[%s4596_s0 + $0x5e8] sm:$0xff]  ;;  %v3051_v33 = vpack.c.bf16 %v158_v26, %v157_v25  ;;  %v215_v26 = vld [vmem:[%s4596_s0 + $0x620] sm:$0xff] }
  0x88   :  { %2620 = vmatprep.mubr.msk.f32.mxu0 %vm279_vm0, %v3594_v57  ;;  %2660 = vmatprep.mubr.msk.f32.mxu1 %vm279_vm0, %v3594_v57  ;;  %v3102_v36 = vpack.c.bf16 %v208_v32, %v207_v31  ;;  %v234_v31 = vld [vmem:[%s4596_s0 + $0x6b8] sm:$0xff]  ;;  %v265_v32 = vld [vmem:[%s4596_s0 + $0x7b0] sm:$0xff] }
  0x89   :  { %3026 = vmatprep.subr.msk.bf16.mxu0 %vm3279_vm1, %v3024_v34  ;;  %3074 = vmatprep.subr.msk.bf16.mxu1 %vm3279_vm1, %v3072_v35  ;;  %v3099_v34 = vpack.c.bf16 %v190_v28, %v189_v27  ;;  %v3054_v35 = vpack.c.bf16 %v176_v30, %v175_v29  ;;  %v216_v27 = vld [vmem:[%s4596_s0 + $0x628] sm:$0xff]  ;;  %v247_v28 = vld [vmem:[%s4596_s0 + $0x720] sm:$0xff]  ;;  %v233_v30 = vld [vmem:[%s4596_s0 + $0x6b0] sm:$0xff] }
  0x8a   :  { %2621 = vmatmul.mubr.msk.f32.gmra.mrb[10].mxu0 %vm279_vm0, %v3594_v57  ;;  %2661 = vmatmul.mubr.msk.f32.gmra.mrb[10].mxu1 %vm279_vm0, %v3594_v57  ;;  %v248_v29 = vld [vmem:[%s4596_s0 + $0x728] sm:$0xff] }
  0x8b   :  { %2622 = vmatprep.mubr.msk.f32.mxu0 %vm279_vm0, %v3607_v60  ;;  %2662 = vmatprep.mubr.msk.f32.mxu1 %vm279_vm0, %v3607_v60 }
  0x8e   :  { %2623 = vmatmul.mubr.msk.f32.gmra.mrb[12].mxu0 %vm279_vm0, %v3607_v60  ;;  %2663 = vmatmul.mubr.msk.f32.gmra.mrb[12].mxu1 %vm279_vm0, %v3607_v60 }
  0x8f   :  { %3029 = vmatpush3.bf16.xpose.msk.msra.mxu0 %vm3279_vm1, %v3027_v44  ;;  %3077 = vmatpush3.bf16.xpose.msk.msra.mxu1 %vm3279_vm1, %v3075_v46  ;;  %v210_v44 = vld [vmem:[%s4596_s0 + $0x5f8] sm:$0xff]  ;;  %v3057_v46 = vpack.c.bf16 %v160_v38, %v159_v37  ;;  %v217_v38 = vld [vmem:[%s4596_s0 + $0x630] sm:$0xff] }
  0x90   :  { %2624 = vmatprep.mubr.msk.f32.mxu0 %vm279_vm0, %v3652_v8  ;;  %2664 = vmatprep.mubr.msk.f32.mxu1 %vm279_vm0, %v3652_v8  ;;  %v3108_v49 = vpack.c.bf16 %v210_v44, %v209_v43  ;;  %v267_v43 = vld [vmem:[%s4596_s0 + $0x7c0] sm:$0xff]  ;;  %v268_v44 = vld [vmem:[%s4596_s0 + $0x7c8] sm:$0xff] }
  0x91   :  { %3032 = vmatprep.subr.msk.bf16.mxu0 %vm3279_vm1, %v3030_v47  ;;  %3080 = vmatprep.subr.msk.bf16.mxu1 %vm3279_vm1, %v3078_v48  ;;  %v3105_v47 = vpack.c.bf16 %v192_v40, %v191_v39  ;;  %v3060_v48 = vpack.c.bf16 %v178_v42, %v177_v41  ;;  %v218_v39 = vld [vmem:[%s4596_s0 + $0x638] sm:$0xff]  ;;  %v235_v41 = vld [vmem:[%s4596_s0 + $0x6c0] sm:$0xff]  ;;  %v236_v42 = vld [vmem:[%s4596_s0 + $0x6c8] sm:$0xff] }
  0x92   :  { %2625 = vmatmul.mubr.msk.f32.gmra.mrb[14].mxu0 %vm279_vm0, %v3652_v8  ;;  %2665 = vmatmul.mubr.msk.f32.gmra.mrb[14].mxu1 %vm279_vm0, %v3652_v8  ;;  %v250_v40 = vld [vmem:[%s4596_s0 + $0x738] sm:$0xff] }
  0x93   :  { %2698 = vmatprep.mubr.msk.f32.mxu0 %vm279_vm0, %v3391_v45  ;;  %2738 = vmatprep.mubr.msk.f32.mxu1 %vm279_vm0, %v3391_v45 }
  0x95   :  { %v4459_v4 = vpop.permute.xlu0 %1778 }
  0x97   :  { %3035 = vmatpush3.bf16.xpose.msk.msra.mxu0 %vm3279_vm1, %v3033_v58  ;;  %3083 = vmatpush3.bf16.xpose.msk.msra.mxu1 %vm3279_vm1, %v3081_v59  ;;  %v260_v58 = vld [vmem:[%s4596_s0 + $0x788] sm:$0xff]  ;;  %v3063_v59 = vpack.c.bf16 %v162_v51, %v161_v50  ;;  %v219_v50 = vld [vmem:[%s4596_s0 + $0x640] sm:$0xff] }
  0x98   :  { %3038 = vmatprep.subr.msk.bf16.mxu0 %vm3279_vm1, %v3036_v61  ;;  %3086 = vmatprep.subr.msk.bf16.mxu1 %vm3279_vm1, %v3084_v62  ;;  %v3111_v61 = vpack.c.bf16 %v194_v53, %v193_v52  ;;  %v3114_v62 = vpack.c.bf16 %v228_v55, %v227_v54  ;;  %v3162_v63 = vpack.c.bf16 %v260_v58, %v259_v56  ;;  %v220_v51 = vld [vmem:[%s4596_s0 + $0x648] sm:$0xff]  ;;  %v251_v52 = vld [vmem:[%s4596_s0 + $0x740] sm:$0xff]  ;;  %v237_v54 = vld [vmem:[%s4596_s0 + $0x6d0] sm:$0xff] }
  0x99   :  { %v252_v53 = vld [vmem:[%s4596_s0 + $0x748] sm:$0xff]  ;;  %v238_v55 = vld [vmem:[%s4596_s0 + $0x6d8] sm:$0xff]  ;;  %v269_v56 = vld [vmem:[%s4596_s0 + $0x7d0] sm:$0xff] }
  0x9a   :  { %v270_v58 = vld [vmem:[%s4596_s0 + $0x7d8] sm:$0xff] }
  0x9f   :  { %3041 = vmatpush3.bf16.xpose.msk.msra.mxu0 %vm3279_vm1, %v3039_v9  ;;  %3089 = vmatpush3.bf16.xpose.msk.msra.mxu1 %vm3279_vm1, %v3087_v10  ;;  %v262_v9 = vld [vmem:[%s4596_s0 + $0x798] sm:$0xff]  ;;  %v3117_v10 = vpack.c.bf16 %v212_v1, %v211_v0  ;;  %v221_v0 = vld [vmem:[%s4596_s0 + $0x650] sm:$0xff] }
  0xa0   :  { %3044 = vmatprep.subr.msk.bf16.mxu0 %vm3279_vm1, %v3042_v11  ;;  %3092 = vmatprep.subr.msk.bf16.mxu1 %vm3279_vm1, %v3090_v12  ;;  %v3165_v11 = vpack.c.bf16 %v244_v3, %v243_v2  ;;  %v3120_v12 = vpack.c.bf16 %v230_v6, %v229_v5  ;;  %v3168_v13 = vpack.c.bf16 %v262_v9, %v261_v7  ;;  %v222_v1 = vld [vmem:[%s4596_s0 + $0x658] sm:$0xff]  ;;  %v253_v2 = vld [vmem:[%s4596_s0 + $0x750] sm:$0xff]  ;;  %v239_v5 = vld [vmem:[%s4596_s0 + $0x6e0] sm:$0xff] }
  0xa1   :  { %v254_v3 = vld [vmem:[%s4596_s0 + $0x758] sm:$0xff]  ;;  %v240_v6 = vld [vmem:[%s4596_s0 + $0x6e8] sm:$0xff]  ;;  %v271_v7 = vld [vmem:[%s4596_s0 + $0x7e0] sm:$0xff] }
  0xa2   :  { %v272_v9 = vld [vmem:[%s4596_s0 + $0x7e8] sm:$0xff] }
  0xa7   :  { %3047 = vmatpush3.bf16.xpose.msk.msra.mxu0 %vm3279_vm1, %v3045_v21  ;;  %3095 = vmatpush3.bf16.xpose.msk.msra.mxu1 %vm3279_vm1, %v3093_v22  ;;  %v264_v21 = vld [vmem:[%s4596_s0 + $0x7a8] sm:$0xff]  ;;  %v3123_v22 = vpack.c.bf16 %v214_v15, %v213_v14  ;;  %v223_v14 = vld [vmem:[%s4596_s0 + $0x660] sm:$0xff] }
  0xa8   :  { %3050 = vmatprep.subr.msk.bf16.mxu0 %vm3279_vm1, %v3048_v23  ;;  %3098 = vmatprep.subr.msk.bf16.mxu1 %vm3279_vm1, %v3096_v24  ;;  %v3171_v23 = vpack.c.bf16 %v246_v17, %v245_v16  ;;  %v3126_v24 = vpack.c.bf16 %v232_v19, %v231_v18  ;;  %v3174_v25 = vpack.c.bf16 %v264_v21, %v263_v20  ;;  %v224_v15 = vld [vmem:[%s4596_s0 + $0x668] sm:$0xff]  ;;  %v255_v16 = vld [vmem:[%s4596_s0 + $0x760] sm:$0xff]  ;;  %v241_v18 = vld [vmem:[%s4596_s0 + $0x6f0] sm:$0xff] }
  0xa9   :  { %v256_v17 = vld [vmem:[%s4596_s0 + $0x768] sm:$0xff]  ;;  %v242_v19 = vld [vmem:[%s4596_s0 + $0x6f8] sm:$0xff]  ;;  %v273_v20 = vld [vmem:[%s4596_s0 + $0x7f0] sm:$0xff] }
  0xaa   :  { %v274_v21 = vld [vmem:[%s4596_s0 + $0x7f8] sm:$0xff] }
  0xaf   :  { %3053 = vmatpush3.bf16.xpose.msk.msra.mxu0 %vm3279_vm1, %v3051_v33  ;;  %3101 = vmatpush3.bf16.xpose.msk.msra.mxu1 %vm3279_vm1, %v3099_v34  ;;  %v266_v33 = vld [vmem:[%s4596_s0 + $0x7b8] sm:$0xff]  ;;  %v3129_v34 = vpack.c.bf16 %v216_v27, %v215_v26  ;;  %v225_v26 = vld [vmem:[%s4596_s0 + $0x670] sm:$0xff] }
  0xb0   :  { %3056 = vmatprep.subr.msk.bf16.mxu0 %vm3279_vm1, %v3054_v35  ;;  %3104 = vmatprep.subr.msk.bf16.mxu1 %vm3279_vm1, %v3102_v36  ;;  %v3177_v35 = vpack.c.bf16 %v248_v29, %v247_v28  ;;  %v3132_v36 = vpack.c.bf16 %v234_v31, %v233_v30  ;;  %v3180_v37 = vpack.c.bf16 %v266_v33, %v265_v32  ;;  %v226_v27 = vld [vmem:[%s4596_s0 + $0x678] sm:$0xff]  ;;  %v257_v28 = vld [vmem:[%s4596_s0 + $0x770] sm:$0xff]  ;;  %v3215_v32 = vld [vmem:[%s4597_s1] sm:$0xff] }
  0xb1   :  { %v258_v29 = vld [vmem:[%s4596_s0 + $0x778] sm:$0xff]  ;;  %v3159_v30 = vpack.c.bf16 %v226_v27, %v225_v26 }
  0xb2   :  { %v3207_v31 = vpack.c.bf16 %v258_v29, %v257_v28 }
  0xb7   :  { %3059 = vmatpush3.bf16.xpose.msk.msra.mxu0 %vm3279_vm1, %v3057_v46  ;;  %3107 = vmatpush3.bf16.xpose.msk.msra.mxu1 %vm3279_vm1, %v3105_v47  ;;  %v3135_v46 = vpack.c.bf16 %v218_v39, %v217_v38  ;;  %v4465_v38 = vpop.permute.xlu1 %1788 }
  0xb8   :  { %3062 = vmatprep.subr.msk.bf16.mxu0 %vm3279_vm1, %v3060_v48  ;;  %3110 = vmatprep.subr.msk.bf16.mxu1 %vm3279_vm1, %v3108_v49  ;;  %v3138_v48 = vpack.c.bf16 %v236_v42, %v235_v41  ;;  %v3186_v49 = vpack.c.bf16 %v268_v44, %v267_v43 }
  0xbf   :  { %3065 = vmatpush3.bf16.xpose.msk.msra.mxu0 %vm3279_vm1, %v3063_v59  ;;  %3113 = vmatpush3.bf16.xpose.msk.msra.mxu1 %vm3279_vm1, %v3111_v61  ;;  %v3141_v59 = vpack.c.bf16 %v220_v51, %v219_v50  ;;  %v3189_v61 = vpack.c.bf16 %v252_v53, %v251_v52 }
  0xc0   :  { %3116 = vmatprep.subr.msk.bf16.mxu0 %vm3279_vm1, %v3114_v62  ;;  %3164 = vmatprep.subr.msk.bf16.mxu1 %vm3279_vm1, %v3162_v63  ;;  %v3144_v62 = vpack.c.bf16 %v238_v55, %v237_v54  ;;  %v3192_v63 = vpack.c.bf16 %v270_v58, %v269_v56 }
  0xc6   :  { %2699 = vmatmul.mubr.msk.f32.vlgmr.msra.gmra.mrb[16].mxu0 %vm279_vm0, %v3391_v45  ;;  %2739 = vmatmul.mubr.msk.f32.vlgmr.msra.gmra.mrb[16].mxu1 %vm279_vm0, %v3391_v45 }
  0xc7   :  { %3119 = vmatpush3.bf16.xpose.msk.msra.mxu0 %vm3279_vm1, %v3117_v10  ;;  %3167 = vmatpush3.bf16.xpose.msk.msra.mxu1 %vm3279_vm1, %v3165_v11  ;;  %v3147_v10 = vpack.c.bf16 %v222_v1, %v221_v0  ;;  %v3195_v11 = vpack.c.bf16 %v254_v3, %v253_v2 }
  0xc8   :  { %2700 = vmatprep.mubr.msk.f32.mxu0 %vm279_vm0, %v3594_v57  ;;  %2740 = vmatprep.mubr.msk.f32.mxu1 %vm279_vm0, %v3594_v57 }
  0xc9   :  { %3122 = vmatprep.subr.msk.bf16.mxu0 %vm3279_vm1, %v3120_v12  ;;  %3170 = vmatprep.subr.msk.bf16.mxu1 %vm3279_vm1, %v3168_v13  ;;  %v3150_v12 = vpack.c.bf16 %v240_v6, %v239_v5  ;;  %v3198_v13 = vpack.c.bf16 %v272_v9, %v271_v7  ;;  %v4477_v7 = vpop.permute.xlu1 %1793 }
  0xca   :  { %2701 = vmatmul.mubr.msk.f32.gmra.mrb[18].mxu0 %vm279_vm0, %v3594_v57  ;;  %2741 = vmatmul.mubr.msk.f32.gmra.mrb[18].mxu1 %vm279_vm0, %v3594_v57 }
  0xcb   :  { %2702 = vmatprep.mubr.msk.f32.mxu0 %vm279_vm0, %v3607_v60  ;;  %2742 = vmatprep.mubr.msk.f32.mxu1 %vm279_vm0, %v3607_v60 }
  0xce   :  { %2703 = vmatmul.mubr.msk.f32.gmra.mrb[20].mxu0 %vm279_vm0, %v3607_v60  ;;  %2743 = vmatmul.mubr.msk.f32.gmra.mrb[20].mxu1 %vm279_vm0, %v3607_v60 }
  0xcf   :  { %3125 = vmatpush3.bf16.xpose.msk.msra.mxu0 %vm3279_vm1, %v3123_v22  ;;  %3173 = vmatpush3.bf16.xpose.msk.msra.mxu1 %vm3279_vm1, %v3171_v23  ;;  %v3153_v22 = vpack.c.bf16 %v224_v15, %v223_v14  ;;  %v3201_v23 = vpack.c.bf16 %v256_v17, %v255_v16 }
  0xd0   :  { %2704 = vmatprep.mubr.msk.f32.mxu0 %vm279_vm0, %v3652_v8  ;;  %2744 = vmatprep.mubr.msk.f32.mxu1 %vm279_vm0, %v3652_v8 }
  0xd1   :  { %3128 = vmatprep.subr.msk.bf16.mxu0 %vm3279_vm1, %v3126_v24  ;;  %3176 = vmatprep.subr.msk.bf16.mxu1 %vm3279_vm1, %v3174_v25  ;;  %v3156_v24 = vpack.c.bf16 %v242_v19, %v241_v18  ;;  %v3204_v25 = vpack.c.bf16 %v274_v21, %v273_v20 }
  0xd2   :  { %2705 = vmatmul.mubr.msk.f32.gmra.mrb[22].mxu0 %vm279_vm0, %v3652_v8  ;;  %2745 = vmatmul.mubr.msk.f32.gmra.mrb[22].mxu1 %vm279_vm0, %v3652_v8 }
  0xd3   :  { %2778 = vmatprep.mubr.msk.f32.mxu0 %vm279_vm0, %v3391_v45  ;;  %2818 = vmatprep.mubr.msk.f32.mxu1 %vm279_vm0, %v3391_v45  ;;  %v249_v45 = vld [vmem:[%s4596_s0 + $0x730] sm:$0xff] }
  0xd4   :  { %v3183_v47 = vpack.c.bf16 %v250_v40, %v249_v45 }
  0xd7   :  { %3131 = vmatpush3.bf16.xpose.msk.msra.mxu0 %vm3279_vm1, %v3129_v34  ;;  %3179 = vmatpush3.bf16.xpose.msk.msra.mxu1 %vm3279_vm1, %v3177_v35 }
  0xd8   :  { %3134 = vmatprep.subr.msk.bf16.mxu0 %vm3279_vm1, %v3132_v36  ;;  %3182 = vmatprep.subr.msk.bf16.mxu1 %vm3279_vm1, %v3180_v37  ;;  %v4461_v36 = vpop.permute.xlu0 %1783 }
  0xdf   :  { %3137 = vmatpush3.bf16.xpose.msk.msra.mxu0 %vm3279_vm1, %v3135_v46  ;;  %3185 = vmatpush3.bf16.xpose.msk.msra.mxu1 %vm3279_vm1, %v3183_v47 }
  0xe0   :  { %3140 = vmatprep.subr.msk.bf16.mxu0 %vm3279_vm1, %v3138_v48  ;;  %3188 = vmatprep.subr.msk.bf16.mxu1 %vm3279_vm1, %v3186_v49 }
  0xe7   :  { %3143 = vmatpush3.bf16.xpose.msk.msra.mxu0 %vm3279_vm1, %v3141_v59  ;;  %3191 = vmatpush3.bf16.xpose.msk.msra.mxu1 %vm3279_vm1, %v3189_v61 }
  0xe8   :  { %3146 = vmatprep.subr.msk.bf16.mxu0 %vm3279_vm1, %v3144_v62  ;;  %3194 = vmatprep.subr.msk.bf16.mxu1 %vm3279_vm1, %v3192_v63 }
  0xef   :  { %3149 = vmatpush3.bf16.xpose.msk.msra.mxu0 %vm3279_vm1, %v3147_v10  ;;  %3197 = vmatpush3.bf16.xpose.msk.msra.mxu1 %vm3279_vm1, %v3195_v11 }
  0xf0   :  { %3152 = vmatprep.subr.msk.bf16.mxu0 %vm3279_vm1, %v3150_v12  ;;  %3200 = vmatprep.subr.msk.bf16.mxu1 %vm3279_vm1, %v3198_v13 }
  0xf7   :  { %3155 = vmatpush3.bf16.xpose.msk.msra.mxu0 %vm3279_vm1, %v3153_v22  ;;  %3203 = vmatpush3.bf16.xpose.msk.msra.mxu1 %vm3279_vm1, %v3201_v23 }
  0xf8   :  { %3158 = vmatprep.subr.msk.bf16.mxu0 %vm3279_vm1, %v3156_v24  ;;  %3206 = vmatprep.subr.msk.bf16.mxu1 %vm3279_vm1, %v3204_v25 }
  0xff   :  { %3161 = vmatpush3.bf16.xpose.msk.msra.mxu0 %vm3279_vm1, %v3159_v30  ;;  %3209 = vmatpush3.bf16.xpose.msk.msra.mxu1 %vm3279_vm1, %v3207_v31 }
 0x106   :  { %2779 = vmatmul.mubr.msk.f32.vlgmr.msra.gmra.mrb[24].mxu0 %vm279_vm0, %v3215_v32  ;;  %2819 = vmatmul.mubr.msk.f32.vlgmr.msra.gmra.mrb[24].mxu1 %vm279_vm0, %v3215_v32 }
 0x107   :  { %2780 = vmatprep.mubr.msk.f32.mxu0 %vm279_vm0, %v3594_v57  ;;  %2820 = vmatprep.mubr.msk.f32.mxu1 %vm279_vm0, %v3594_v57 }
 0x10a   :  { %2781 = vmatmul.mubr.msk.f32.gmra.mrb[26].mxu0 %vm279_vm0, %v3594_v57  ;;  %2821 = vmatmul.mubr.msk.f32.gmra.mrb[26].mxu1 %vm279_vm0, %v3594_v57 }
 0x10b   :  { %2782 = vmatprep.mubr.msk.f32.mxu0 %vm279_vm0, %v3607_v60  ;;  %2822 = vmatprep.mubr.msk.f32.mxu1 %vm279_vm0, %v3607_v60 }
 0x10e   :  { %2783 = vmatmul.mubr.msk.f32.gmra.mrb[28].mxu0 %vm279_vm0, %v3607_v60  ;;  %2823 = vmatmul.mubr.msk.f32.gmra.mrb[28].mxu1 %vm279_vm0, %v3607_v60 }
 0x10f   :  { %2784 = vmatprep.mubr.msk.f32.mxu0 %vm279_vm0, %v3652_v8  ;;  %2824 = vmatprep.mubr.msk.f32.mxu1 %vm279_vm0, %v3652_v8 }
 0x112   :  { %2785 = vmatmul.mubr.msk.f32.gmra.mrb[30].mxu0 %vm279_vm0, %v3652_v8  ;;  %2825 = vmatmul.mubr.msk.f32.gmra.mrb[30].mxu1 %vm279_vm0, %v3652_v8 }
 0x118   :  { %v1126_v57 = vpop.f32.mrb[0].mxu0 }
 0x119   :  { %v1215_v33 = vpop.f32.mrb[0].mxu1  ;;  %v1128_v34 = vpop.f32.mrb[1].mxu0  ;;  %v1796_v60 = vsub.f32 %v1126_v57, %v4459_v4 }
 0x11a   :  { %v1217_v35 = vpop.f32.mrb[1].mxu1  ;;  %v1798_v37 = vsub.f32 %v1215_v33, %v4459_v4  ;;  %v1797_v39 = vsub.f32 %v1128_v34, %v4459_v4 }
 0x11b   :  { %v1799_v45 = vsub.f32 %v1217_v35, %v4459_v4  ;;  %v1860_v48 = vmul.f32 %v1796_v60, %v1796_v60 }
 0x11c   :  { %v1862_v49 = vmul.f32 %v1798_v37, %v1798_v37  ;;  %v1861_v52 = vmul.f32 %v1797_v39, %v1797_v39 }
 0x11d   :  { %v1132_v40 = vpop.f32.mrb[2].mxu0  ;;  %v1221_v8 = vpop.f32.mrb[2].mxu1  ;;  %v1863_v53 = vmul.f32 %v1799_v45, %v1799_v45 }
 0x11e   :  { %v1812_v41 = vsub.f32 %v1132_v40, %v4461_v36  ;;  %v1814_v42 = vsub.f32 %v1221_v8, %v4461_v36  ;;  %v1134_v43 = vpop.f32.mrb[3].mxu0  ;;  %v1223_v44 = vpop.f32.mrb[3].mxu1 }
 0x11f   :  { %v1813_v46 = vsub.f32 %v1134_v43, %v4461_v36  ;;  %v1815_v47 = vsub.f32 %v1223_v44, %v4461_v36  ;;  %v3241_v43 = vmov 1966171168  }
 0x120   :  { %v1876_v50 = vmul.f32 %v1812_v41, %v1812_v41  ;;  %v1878_v51 = vmul.f32 %v1814_v42, %v1814_v42  ;;  %v2107_v44 = vunpack.c.l.s4 %v3241_v43 }
 0x121   :  { %v1877_v54 = vmul.f32 %v1813_v46, %v1813_v46  ;;  %v1879_v55 = vmul.f32 %v1815_v47, %v1815_v47  ;;  %v1138_v56 = vpop.f32.mrb[4].mxu0  ;;  %v1227_v58 = vpop.f32.mrb[4].mxu1  ;;  %v2109_v46 = vlaneseq }
 0x122   :  { %v1924_v59 = vadd.f32 %v1876_v50, %v1860_v48  ;;  %v1942_v61 = vadd.f32 %v1878_v51, %v1862_v49  ;;  %v1828_v62 = vsub.f32 %v1138_v56, %v4465_v38  ;;  %v1830_v63 = vsub.f32 %v1227_v58, %v4465_v38  ;;  %v1140_v0 = vpop.f32.mrb[5].mxu0  ;;  %v1229_v1 = vpop.f32.mrb[5].mxu1 }
 0x123   :  { %v1933_v2 = vadd.f32 %v1877_v54, %v1861_v52  ;;  %v1951_v3 = vadd.f32 %v1879_v55, %v1863_v53  ;;  %v1829_v5 = vsub.f32 %v1140_v0, %v4465_v38  ;;  %v1831_v6 = vsub.f32 %v1229_v1, %v4465_v38 }
 0x124   :  { %v1892_v9 = vmul.f32 %v1828_v62, %v1828_v62  ;;  %v1894_v10 = vmul.f32 %v1830_v63, %v1830_v63  ;;  %v4486_v52 = vstv %s4599_s3  ;;  %v2108_v56 = vunpack.c.0.s8 %v2107_v44  ;;  %s3242_s3 = smov [#allocation3]  }
 0x125   :  { %v1893_v11 = vmul.f32 %v1829_v5, %v1829_v5  ;;  %v1895_v12 = vmul.f32 %v1831_v6, %v1831_v6  ;;  %v1144_v13 = vpop.f32.mrb[6].mxu0  ;;  %v1233_v14 = vpop.f32.mrb[6].mxu1  ;;  %v2110_v58 = vshrl.u32 %v2109_v46, 7  ;;  %s2210_s10 = sshll.u32 %s3242_s3, 4  ;;  %s2211_s10 = int_to_ptr.vmem [resolvable:$true] %s2210_s10 }
 0x126   :  { %v1925_v15 = vadd.f32 %v1924_v59, %v1892_v9  ;;  %v1943_v16 = vadd.f32 %v1942_v61, %v1894_v10  ;;  %v1844_v17 = vsub.f32 %v1144_v13, %v4477_v7  ;;  %v1846_v18 = vsub.f32 %v1233_v14, %v4477_v7  ;;  %v1146_v19 = vpop.f32.mrb[7].mxu0  ;;  %v1235_v20 = vpop.f32.mrb[7].mxu1  ;;  %s3216_s11 = scalar_lea.vmem %s2211_s10, 256  ;;  %p3221_p1 = scmp.lt.s32.totalorder %s2211_s10, %s2211_s10 }
 0x127   :  { %v1934_v21 = vadd.f32 %v1933_v2, %v1893_v11  ;;  %v1952_v22 = vadd.f32 %v1951_v3, %v1895_v12  ;;  %v1845_v23 = vsub.f32 %v1146_v19, %v4477_v7  ;;  %v1847_v24 = vsub.f32 %v1235_v20, %v4477_v7  ;;  %p3217_p0 = scmp.ne.s32.totalorder %s2211_s10, %s3216_s11  ;;  %p3222_p2 = scmp.lt.s32.totalorder %s3216_s11, %s3216_s11 }
 0x128   :  { %v1908_v25 = vmul.f32 %v1844_v17, %v1844_v17  ;;  %v1910_v26 = vmul.f32 %v1846_v18, %v1846_v18  ;;  %v4492_v5 = vsub.s32 %v2108_v56, %v2110_v58 }
 0x129   :  { %v1909_v27 = vmul.f32 %v1845_v23, %v1845_v23  ;;  %v1911_v28 = vmul.f32 %v1847_v24, %v1847_v24  ;;  %p3223_p3 = por %p3222_p2, %p3221_p1 }
 0x12a   :  { %v1926_v29 = vadd.f32 %v1925_v15, %v1908_v25  ;;  %v1944_v30 = vadd.f32 %v1943_v16, %v1910_v26 }
 0x12b   :  { %v1935_v31 = vadd.f32 %v1934_v21, %v1909_v27  ;;  %v1953_v32 = vadd.f32 %v1952_v22, %v1911_v28  ;;  %p3224_p4 = pnand %p3223_p3, %p3217_p0 }
 0x12c   :  { %v1927_v57 = vrot.slane %v1926_v29, 4  ;;  %v1945_v33 = vrot.slane %v1944_v30, 4 }
 0x12d   :  { %v1936_v34 = vrot.slane %v1935_v31, 4  ;;  %v1954_v35 = vrot.slane %v1953_v32, 4 }
 0x12e   :  { %v1928_v60 = vadd.f32 %v1927_v57, %v1926_v29  ;;  %v1946_v37 = vadd.f32 %v1945_v33, %v1944_v30 }
 0x12f   :  { %v1937_v39 = vadd.f32 %v1936_v34, %v1935_v31  ;;  %v1955_v45 = vadd.f32 %v1954_v35, %v1953_v32 }
 0x130   :  { %v1929_v40 = vrot.slane %v1928_v60, 2  ;;  %v1947_v8 = vrot.slane %v1946_v37, 2 }
 0x131   :  { %v1938_v41 = vrot.slane %v1937_v39, 2  ;;  %v1956_v42 = vrot.slane %v1955_v45, 2 }
 0x132   :  { %v1930_v47 = vadd.f32 %v1929_v40, %v1928_v60  ;;  %v1948_v48 = vadd.f32 %v1947_v8, %v1946_v37 }
 0x133   :  { %v1939_v49 = vadd.f32 %v1938_v41, %v1937_v39  ;;  %v1957_v50 = vadd.f32 %v1956_v42, %v1955_v45 }
 0x134   :  { %v1931_v51 = vrot.slane %v1930_v47, 1  ;;  %v1949_v53 = vrot.slane %v1948_v48, 1 }
 0x135   :  { %v1940_v54 = vrot.slane %v1939_v49, 1  ;;  %v1958_v55 = vrot.slane %v1957_v50, 1 }
 0x136   :  { %v1932_v59 = vadd.f32 %v1931_v51, %v1930_v47  ;;  %v1950_v61 = vadd.f32 %v1949_v53, %v1948_v48 }
 0x137   :  { %v1941_v62 = vadd.f32 %v1940_v54, %v1939_v49  ;;  %v1959_v63 = vadd.f32 %v1958_v55, %v1957_v50 }
 0x138   :  { %v2070_v0 = vadd.f32 %v4486_v52, %v1932_v59  ;;  %v2072_v1 = vadd.f32 %v4486_v52, %v1950_v61 }
 0x139   :  { %v2071_v2 = vadd.f32 %v4486_v52, %v1941_v62  ;;  %v2073_v3 = vadd.f32 %v4486_v52, %v1959_v63 }
 0x13b   :  { %v2102_v6 = vcombine.low %v2070_v0, %v2071_v2  ;;  %v2103_v9 = vcombine.low %v2072_v1, %v2073_v3 }
 0x13d   :  { %v4495_v10 = vrot.slane %v2102_v6, %v4492_v5  ;;  %v4498_v11 = vrot.slane %v2103_v9, %v4492_v5 }
 0x13f   :  { %v2134_v12 = vcombine.low %v4495_v10, %v4498_v11 }
 0x159   :  { %v1304_v13 = vpop.f32.mrb[8].mxu0  ;;  %v1393_v14 = vpop.f32.mrb[8].mxu1 }
 0x15a   :  { %v1306_v15 = vpop.f32.mrb[9].mxu0  ;;  %v1395_v16 = vpop.f32.mrb[9].mxu1  ;;  %v1800_v17 = vsub.f32 %v1304_v13, %v4459_v4  ;;  %v1802_v18 = vsub.f32 %v1393_v14, %v4459_v4 }
 0x15b   :  { %v1801_v19 = vsub.f32 %v1306_v15, %v4459_v4  ;;  %v1803_v20 = vsub.f32 %v1395_v16, %v4459_v4 }
 0x15c   :  { %v1864_v29 = vmul.f32 %v1800_v17, %v1800_v17  ;;  %v1866_v30 = vmul.f32 %v1802_v18, %v1802_v18 }
 0x15d   :  { %v1310_v21 = vpop.f32.mrb[10].mxu0  ;;  %v1399_v22 = vpop.f32.mrb[10].mxu1  ;;  %v1865_v57 = vmul.f32 %v1801_v19, %v1801_v19  ;;  %v1867_v33 = vmul.f32 %v1803_v20, %v1803_v20 }
 0x15e   :  { %v1816_v23 = vsub.f32 %v1310_v21, %v4461_v36  ;;  %v1818_v24 = vsub.f32 %v1399_v22, %v4461_v36  ;;  %v1312_v25 = vpop.f32.mrb[11].mxu0  ;;  %v1401_v26 = vpop.f32.mrb[11].mxu1 }
 0x15f   :  { %v1817_v27 = vsub.f32 %v1312_v25, %v4461_v36  ;;  %v1819_v28 = vsub.f32 %v1401_v26, %v4461_v36 }
 0x160   :  { %v1880_v31 = vmul.f32 %v1816_v23, %v1816_v23  ;;  %v1882_v32 = vmul.f32 %v1818_v24, %v1818_v24 }
 0x161   :  { %v1881_v34 = vmul.f32 %v1817_v27, %v1817_v27  ;;  %v1883_v35 = vmul.f32 %v1819_v28, %v1819_v28  ;;  %v1316_v60 = vpop.f32.mrb[12].mxu0  ;;  %v1405_v37 = vpop.f32.mrb[12].mxu1 }
 0x162   :  { %v1960_v39 = vadd.f32 %v1880_v31, %v1864_v29  ;;  %v1978_v45 = vadd.f32 %v1882_v32, %v1866_v30  ;;  %v1832_v40 = vsub.f32 %v1316_v60, %v4465_v38  ;;  %v1834_v8 = vsub.f32 %v1405_v37, %v4465_v38  ;;  %v1318_v41 = vpop.f32.mrb[13].mxu0  ;;  %v1407_v42 = vpop.f32.mrb[13].mxu1 }
 0x163   :  { %v1969_v43 = vadd.f32 %v1881_v34, %v1865_v57  ;;  %v1987_v44 = vadd.f32 %v1883_v35, %v1867_v33  ;;  %v1833_v46 = vsub.f32 %v1318_v41, %v4465_v38  ;;  %v1835_v47 = vsub.f32 %v1407_v42, %v4465_v38 }
 0x164   :  { %v1896_v48 = vmul.f32 %v1832_v40, %v1832_v40  ;;  %v1898_v49 = vmul.f32 %v1834_v8, %v1834_v8 }
 0x165   :  { %v1897_v50 = vmul.f32 %v1833_v46, %v1833_v46  ;;  %v1899_v51 = vmul.f32 %v1835_v47, %v1835_v47  ;;  %v1322_v53 = vpop.f32.mrb[14].mxu0  ;;  %v1411_v54 = vpop.f32.mrb[14].mxu1 }
 0x166   :  { %v1961_v55 = vadd.f32 %v1960_v39, %v1896_v48  ;;  %v1979_v56 = vadd.f32 %v1978_v45, %v1898_v49  ;;  %v1848_v58 = vsub.f32 %v1322_v53, %v4477_v7  ;;  %v1850_v59 = vsub.f32 %v1411_v54, %v4477_v7  ;;  %v1324_v61 = vpop.f32.mrb[15].mxu0  ;;  %v1413_v62 = vpop.f32.mrb[15].mxu1 }
 0x167   :  { %v1970_v63 = vadd.f32 %v1969_v43, %v1897_v50  ;;  %v1988_v0 = vadd.f32 %v1987_v44, %v1899_v51  ;;  %v1849_v1 = vsub.f32 %v1324_v61, %v4477_v7  ;;  %v1851_v2 = vsub.f32 %v1413_v62, %v4477_v7 }
 0x168   :  { %v1912_v3 = vmul.f32 %v1848_v58, %v1848_v58  ;;  %v1914_v6 = vmul.f32 %v1850_v59, %v1850_v59  ;;  %v2142_v50 = vrot.slane %v2134_v12, %v4492_v5 }
 0x169   :  { %v1913_v9 = vmul.f32 %v1849_v1, %v1849_v1  ;;  %v1915_v13 = vmul.f32 %v1851_v2, %v1851_v2 }
 0x16a   :  { %v1962_v14 = vadd.f32 %v1961_v55, %v1912_v3  ;;  %v1980_v15 = vadd.f32 %v1979_v56, %v1914_v6 }
 0x16b   :  { %v1971_v16 = vadd.f32 %v1970_v63, %v1913_v9  ;;  %v1989_v17 = vadd.f32 %v1988_v0, %v1915_v13 }
 0x16c   :  { %v1963_v18 = vrot.slane %v1962_v14, 4  ;;  %v1981_v19 = vrot.slane %v1980_v15, 4 }
 0x16d   :  { %v1972_v20 = vrot.slane %v1971_v16, 4  ;;  %v1990_v21 = vrot.slane %v1989_v17, 4 }
 0x16e   :  { %v1964_v22 = vadd.f32 %v1963_v18, %v1962_v14  ;;  %v1982_v23 = vadd.f32 %v1981_v19, %v1980_v15 }
 0x16f   :  { %v1973_v24 = vadd.f32 %v1972_v20, %v1971_v16  ;;  %v1991_v25 = vadd.f32 %v1990_v21, %v1989_v17 }
 0x170   :  { %v1965_v26 = vrot.slane %v1964_v22, 2  ;;  %v1983_v27 = vrot.slane %v1982_v23, 2 }
 0x171   :  { %v1974_v28 = vrot.slane %v1973_v24, 2  ;;  %v1992_v29 = vrot.slane %v1991_v25, 2 }
 0x172   :  { %v1966_v30 = vadd.f32 %v1965_v26, %v1964_v22  ;;  %v1984_v31 = vadd.f32 %v1983_v27, %v1982_v23 }
 0x173   :  { %v1975_v32 = vadd.f32 %v1974_v28, %v1973_v24  ;;  %v1993_v57 = vadd.f32 %v1992_v29, %v1991_v25 }
 0x174   :  { %v1967_v33 = vrot.slane %v1966_v30, 1  ;;  %v1985_v34 = vrot.slane %v1984_v31, 1 }
 0x175   :  { %v1976_v35 = vrot.slane %v1975_v32, 1  ;;  %v1994_v60 = vrot.slane %v1993_v57, 1 }
 0x176   :  { %v1968_v37 = vadd.f32 %v1967_v33, %v1966_v30  ;;  %v1986_v39 = vadd.f32 %v1985_v34, %v1984_v31 }
 0x177   :  { %v1977_v45 = vadd.f32 %v1976_v35, %v1975_v32  ;;  %v1995_v40 = vadd.f32 %v1994_v60, %v1993_v57 }
 0x178   :  { %v2074_v8 = vadd.f32 %v4486_v52, %v1968_v37  ;;  %v2076_v41 = vadd.f32 %v4486_v52, %v1986_v39 }
 0x179   :  { %v2075_v42 = vadd.f32 %v4486_v52, %v1977_v45  ;;  %v2077_v43 = vadd.f32 %v4486_v52, %v1995_v40 }
 0x17b   :  { %v2104_v44 = vcombine.low %v2074_v8, %v2075_v42  ;;  %v2105_v46 = vcombine.low %v2076_v41, %v2077_v43 }
 0x17d   :  { %v2126_v47 = vrot.slane %v2104_v44, %v4492_v5  ;;  %v2133_v48 = vrot.slane %v2105_v46, %v4492_v5 }
 0x17f   :  { %v2135_v49 = vcombine.low %v2126_v47, %v2133_v48 }
 0x181   :  { %v2149_v51 = vrot.slane %v2135_v49, %v4492_v5 }
 0x183   :  { %v2150_v53 = vcombine.low %v2142_v50, %v2149_v51 }
 0x185   :  { %2202 = vst [vmem:[#allocation3] sm:$0xff] %v2150_v53 }
 0x199   :  { %v1482_v54 = vpop.f32.mrb[16].mxu0  ;;  %v1571_v55 = vpop.f32.mrb[16].mxu1 }
 0x19a   :  { %v1484_v56 = vpop.f32.mrb[17].mxu0  ;;  %v1573_v58 = vpop.f32.mrb[17].mxu1  ;;  %v1804_v59 = vsub.f32 %v1482_v54, %v4459_v4  ;;  %v1806_v61 = vsub.f32 %v1571_v55, %v4459_v4 }
 0x19b   :  { %v1805_v62 = vsub.f32 %v1484_v56, %v4459_v4  ;;  %v1807_v63 = vsub.f32 %v1573_v58, %v4459_v4 }
 0x19c   :  { %v1868_v9 = vmul.f32 %v1804_v59, %v1804_v59  ;;  %v1870_v13 = vmul.f32 %v1806_v61, %v1806_v61 }
 0x19d   :  { %v1488_v0 = vpop.f32.mrb[18].mxu0  ;;  %v1577_v1 = vpop.f32.mrb[18].mxu1  ;;  %v1869_v16 = vmul.f32 %v1805_v62, %v1805_v62  ;;  %v1871_v17 = vmul.f32 %v1807_v63, %v1807_v63 }
 0x19e   :  { %v1820_v10 = vsub.f32 %v1488_v0, %v4461_v36  ;;  %v1822_v11 = vsub.f32 %v1577_v1, %v4461_v36  ;;  %v1490_v12 = vpop.f32.mrb[19].mxu0  ;;  %v1579_v2 = vpop.f32.mrb[19].mxu1 }
 0x19f   :  { %v1821_v3 = vsub.f32 %v1490_v12, %v4461_v36  ;;  %v1823_v6 = vsub.f32 %v1579_v2, %v4461_v36 }
 0x1a0   :  { %v1884_v14 = vmul.f32 %v1820_v10, %v1820_v10  ;;  %v1886_v15 = vmul.f32 %v1822_v11, %v1822_v11 }
 0x1a1   :  { %v1885_v18 = vmul.f32 %v1821_v3, %v1821_v3  ;;  %v1887_v19 = vmul.f32 %v1823_v6, %v1823_v6  ;;  %v1494_v20 = vpop.f32.mrb[20].mxu0  ;;  %v1583_v21 = vpop.f32.mrb[20].mxu1 }
 0x1a2   :  { %v1996_v22 = vadd.f32 %v1884_v14, %v1868_v9  ;;  %v2014_v23 = vadd.f32 %v1886_v15, %v1870_v13  ;;  %v1836_v24 = vsub.f32 %v1494_v20, %v4465_v38  ;;  %v1838_v25 = vsub.f32 %v1583_v21, %v4465_v38  ;;  %v1496_v26 = vpop.f32.mrb[21].mxu0  ;;  %v1585_v27 = vpop.f32.mrb[21].mxu1 }
 0x1a3   :  { %v2005_v28 = vadd.f32 %v1885_v18, %v1869_v16  ;;  %v2023_v29 = vadd.f32 %v1887_v19, %v1871_v17  ;;  %v1837_v30 = vsub.f32 %v1496_v26, %v4465_v38  ;;  %v1839_v31 = vsub.f32 %v1585_v27, %v4465_v38 }
 0x1a4   :  { %v1900_v32 = vmul.f32 %v1836_v24, %v1836_v24  ;;  %v1902_v57 = vmul.f32 %v1838_v25, %v1838_v25 }
 0x1a5   :  { %v1901_v33 = vmul.f32 %v1837_v30, %v1837_v30  ;;  %v1903_v34 = vmul.f32 %v1839_v31, %v1839_v31  ;;  %v1500_v35 = vpop.f32.mrb[22].mxu0  ;;  %v1589_v60 = vpop.f32.mrb[22].mxu1 }
 0x1a6   :  { %v1997_v37 = vadd.f32 %v1996_v22, %v1900_v32  ;;  %v2015_v39 = vadd.f32 %v2014_v23, %v1902_v57  ;;  %v1852_v45 = vsub.f32 %v1500_v35, %v4477_v7  ;;  %v1854_v40 = vsub.f32 %v1589_v60, %v4477_v7  ;;  %v1502_v8 = vpop.f32.mrb[23].mxu0  ;;  %v1591_v41 = vpop.f32.mrb[23].mxu1 }
 0x1a7   :  { %v2006_v42 = vadd.f32 %v2005_v28, %v1901_v33  ;;  %v2024_v43 = vadd.f32 %v2023_v29, %v1903_v34  ;;  %v1853_v44 = vsub.f32 %v1502_v8, %v4477_v7  ;;  %v1855_v46 = vsub.f32 %v1591_v41, %v4477_v7 }
 0x1a8   :  { %v1916_v47 = vmul.f32 %v1852_v45, %v1852_v45  ;;  %v1918_v48 = vmul.f32 %v1854_v40, %v1854_v40 }
 0x1a9   :  { %v1917_v49 = vmul.f32 %v1853_v44, %v1853_v44  ;;  %v1919_v50 = vmul.f32 %v1855_v46, %v1855_v46 }
 0x1aa   :  { %v1998_v51 = vadd.f32 %v1997_v37, %v1916_v47  ;;  %v2016_v53 = vadd.f32 %v2015_v39, %v1918_v48 }
 0x1ab   :  { %v2007_v54 = vadd.f32 %v2006_v42, %v1917_v49  ;;  %v2025_v55 = vadd.f32 %v2024_v43, %v1919_v50 }
 0x1ac   :  { %v1999_v56 = vrot.slane %v1998_v51, 4  ;;  %v2017_v58 = vrot.slane %v2016_v53, 4 }
 0x1ad   :  { %v2008_v59 = vrot.slane %v2007_v54, 4  ;;  %v2026_v61 = vrot.slane %v2025_v55, 4 }
 0x1ae   :  { %v2000_v62 = vadd.f32 %v1999_v56, %v1998_v51  ;;  %v2018_v63 = vadd.f32 %v2017_v58, %v2016_v53 }
 0x1af   :  { %v2009_v0 = vadd.f32 %v2008_v59, %v2007_v54  ;;  %v2027_v1 = vadd.f32 %v2026_v61, %v2025_v55 }
 0x1b0   :  { %v2001_v10 = vrot.slane %v2000_v62, 2  ;;  %v2019_v11 = vrot.slane %v2018_v63, 2 }
 0x1b1   :  { %v2010_v12 = vrot.slane %v2009_v0, 2  ;;  %v2028_v2 = vrot.slane %v2027_v1, 2 }
 0x1b2   :  { %v2002_v3 = vadd.f32 %v2001_v10, %v2000_v62  ;;  %v2020_v6 = vadd.f32 %v2019_v11, %v2018_v63 }
 0x1b3   :  { %v2011_v9 = vadd.f32 %v2010_v12, %v2009_v0  ;;  %v2029_v13 = vadd.f32 %v2028_v2, %v2027_v1 }
 0x1b4   :  { %v2003_v14 = vrot.slane %v2002_v3, 1  ;;  %v2021_v15 = vrot.slane %v2020_v6, 1 }
 0x1b5   :  { %v2012_v16 = vrot.slane %v2011_v9, 1  ;;  %v2030_v17 = vrot.slane %v2029_v13, 1 }
 0x1b6   :  { %v2004_v18 = vadd.f32 %v2003_v14, %v2002_v3  ;;  %v2022_v19 = vadd.f32 %v2021_v15, %v2020_v6 }
 0x1b7   :  { %v2013_v20 = vadd.f32 %v2012_v16, %v2011_v9  ;;  %v2031_v21 = vadd.f32 %v2030_v17, %v2029_v13 }
 0x1b8   :  { %v2078_v22 = vadd.f32 %v4486_v52, %v2004_v18  ;;  %v2080_v23 = vadd.f32 %v4486_v52, %v2022_v19 }
 0x1b9   :  { %v2079_v24 = vadd.f32 %v4486_v52, %v2013_v20  ;;  %v2081_v25 = vadd.f32 %v4486_v52, %v2031_v21 }
 0x1bb   :  { %v2151_v26 = vcombine.low %v2078_v22, %v2079_v24  ;;  %v2152_v27 = vcombine.low %v2080_v23, %v2081_v25 }
 0x1bd   :  { %v4550_v28 = vrot.slane %v2151_v26, %v4492_v5  ;;  %v4553_v29 = vrot.slane %v2152_v27, %v4492_v5 }
 0x1bf   :  { %v2183_v30 = vcombine.low %v4550_v28, %v4553_v29 }
 0x1d9   :  { %v1660_v31 = vpop.f32.mrb[24].mxu0  ;;  %v1749_v32 = vpop.f32.mrb[24].mxu1 }
 0x1da   :  { %v1662_v57 = vpop.f32.mrb[25].mxu0  ;;  %v1751_v33 = vpop.f32.mrb[25].mxu1  ;;  %v1808_v34 = vsub.f32 %v1660_v31, %v4459_v4  ;;  %v1810_v35 = vsub.f32 %v1749_v32, %v4459_v4 }
 0x1db   :  { %v1809_v60 = vsub.f32 %v1662_v57, %v4459_v4  ;;  %v1811_v37 = vsub.f32 %v1751_v33, %v4459_v4 }
 0x1dc   :  { %v1872_v46 = vmul.f32 %v1808_v34, %v1808_v34  ;;  %v1874_v47 = vmul.f32 %v1810_v35, %v1810_v35 }
 0x1dd   :  { %v1666_v39 = vpop.f32.mrb[26].mxu0  ;;  %v1755_v45 = vpop.f32.mrb[26].mxu1  ;;  %v1873_v50 = vmul.f32 %v1809_v60, %v1809_v60  ;;  %v1875_v51 = vmul.f32 %v1811_v37, %v1811_v37 }
 0x1de   :  { %v1824_v40 = vsub.f32 %v1666_v39, %v4461_v36  ;;  %v1826_v8 = vsub.f32 %v1755_v45, %v4461_v36  ;;  %v1668_v41 = vpop.f32.mrb[27].mxu0  ;;  %v1757_v42 = vpop.f32.mrb[27].mxu1 }
 0x1df   :  { %v1825_v43 = vsub.f32 %v1668_v41, %v4461_v36  ;;  %v1827_v44 = vsub.f32 %v1757_v42, %v4461_v36 }
 0x1e0   :  { %v1888_v48 = vmul.f32 %v1824_v40, %v1824_v40  ;;  %v1890_v49 = vmul.f32 %v1826_v8, %v1826_v8 }
 0x1e1   :  { %v1889_v53 = vmul.f32 %v1825_v43, %v1825_v43  ;;  %v1891_v4 = vmul.f32 %v1827_v44, %v1827_v44  ;;  %v1672_v54 = vpop.f32.mrb[28].mxu0  ;;  %v1761_v55 = vpop.f32.mrb[28].mxu1 }
 0x1e2   :  { %v2032_v56 = vadd.f32 %v1888_v48, %v1872_v46  ;;  %v2050_v58 = vadd.f32 %v1890_v49, %v1874_v47  ;;  %v1840_v59 = vsub.f32 %v1672_v54, %v4465_v38  ;;  %v1842_v61 = vsub.f32 %v1761_v55, %v4465_v38  ;;  %v1674_v62 = vpop.f32.mrb[29].mxu0  ;;  %v1763_v63 = vpop.f32.mrb[29].mxu1 }
 0x1e3   :  { %v2041_v0 = vadd.f32 %v1889_v53, %v1873_v50  ;;  %v2059_v36 = vadd.f32 %v1891_v4, %v1875_v51  ;;  %v1841_v1 = vsub.f32 %v1674_v62, %v4465_v38  ;;  %v1843_v10 = vsub.f32 %v1763_v63, %v4465_v38 }
 0x1e4   :  { %v1904_v11 = vmul.f32 %v1840_v59, %v1840_v59  ;;  %v1906_v12 = vmul.f32 %v1842_v61, %v1842_v61 }
 0x1e5   :  { %v1905_v2 = vmul.f32 %v1841_v1, %v1841_v1  ;;  %v1907_v3 = vmul.f32 %v1843_v10, %v1843_v10  ;;  %v1678_v6 = vpop.f32.mrb[30].mxu0  ;;  %v1767_v9 = vpop.f32.mrb[30].mxu1  ;;  %v2191_v1 = vrot.slane %v2183_v30, %v4492_v5 }
 0x1e6   :  { %v2033_v13 = vadd.f32 %v2032_v56, %v1904_v11  ;;  %v2051_v14 = vadd.f32 %v2050_v58, %v1906_v12  ;;  %v1856_v15 = vsub.f32 %v1678_v6, %v4477_v7  ;;  %v1858_v16 = vsub.f32 %v1767_v9, %v4477_v7  ;;  %v1680_v17 = vpop.f32.mrb[31].mxu0  ;;  %v1769_v18 = vpop.f32.mrb[31].mxu1 }
 0x1e7   :  { %v2042_v19 = vadd.f32 %v2041_v0, %v1905_v2  ;;  %v2060_v20 = vadd.f32 %v2059_v36, %v1907_v3  ;;  %v1857_v21 = vsub.f32 %v1680_v17, %v4477_v7  ;;  %v1859_v38 = vsub.f32 %v1769_v18, %v4477_v7 }
 0x1e8   :  { %v1920_v22 = vmul.f32 %v1856_v15, %v1856_v15  ;;  %v1922_v23 = vmul.f32 %v1858_v16, %v1858_v16 }
 0x1e9   :  { %v1921_v24 = vmul.f32 %v1857_v21, %v1857_v21  ;;  %v1923_v25 = vmul.f32 %v1859_v38, %v1859_v38 }
 0x1ea   :  { %v2034_v26 = vadd.f32 %v2033_v13, %v1920_v22  ;;  %v2052_v27 = vadd.f32 %v2051_v14, %v1922_v23 }
 0x1eb   :  { %v2043_v31 = vadd.f32 %v2042_v19, %v1921_v24  ;;  %v2061_v32 = vadd.f32 %v2060_v20, %v1923_v25 }
 0x1ec   :  { %v2035_v57 = vrot.slane %v2034_v26, 4  ;;  %v2053_v33 = vrot.slane %v2052_v27, 4 }
 0x1ed   :  { %v2044_v34 = vrot.slane %v2043_v31, 4  ;;  %v2062_v35 = vrot.slane %v2061_v32, 4 }
 0x1ee   :  { %v2036_v60 = vadd.f32 %v2035_v57, %v2034_v26  ;;  %v2054_v37 = vadd.f32 %v2053_v33, %v2052_v27 }
 0x1ef   :  { %v2045_v39 = vadd.f32 %v2044_v34, %v2043_v31  ;;  %v2063_v45 = vadd.f32 %v2062_v35, %v2061_v32 }
 0x1f0   :  { %v2037_v40 = vrot.slane %v2036_v60, 2  ;;  %v2055_v8 = vrot.slane %v2054_v37, 2 }
 0x1f1   :  { %v2046_v41 = vrot.slane %v2045_v39, 2  ;;  %v2064_v7 = vrot.slane %v2063_v45, 2 }
 0x1f2   :  { %v2038_v42 = vadd.f32 %v2037_v40, %v2036_v60  ;;  %v2056_v43 = vadd.f32 %v2055_v8, %v2054_v37 }
 0x1f3   :  { %v2047_v44 = vadd.f32 %v2046_v41, %v2045_v39  ;;  %v2065_v46 = vadd.f32 %v2064_v7, %v2063_v45 }
 0x1f4   :  { %v2039_v47 = vrot.slane %v2038_v42, 1  ;;  %v2057_v48 = vrot.slane %v2056_v43, 1 }
 0x1f5   :  { %v2048_v49 = vrot.slane %v2047_v44, 1  ;;  %v2066_v50 = vrot.slane %v2065_v46, 1 }
 0x1f6   :  { %v2040_v51 = vadd.f32 %v2039_v47, %v2038_v42  ;;  %v2058_v53 = vadd.f32 %v2057_v48, %v2056_v43 }
 0x1f7   :  { %v2049_v4 = vadd.f32 %v2048_v49, %v2047_v44  ;;  %v2067_v54 = vadd.f32 %v2066_v50, %v2065_v46 }
 0x1f8   :  { %v2082_v55 = vadd.f32 %v4486_v52, %v2040_v51  ;;  %v2084_v56 = vadd.f32 %v4486_v52, %v2058_v53 }
 0x1f9   :  { %v2083_v58 = vadd.f32 %v4486_v52, %v2049_v4  ;;  %v2085_v59 = vadd.f32 %v4486_v52, %v2067_v54 }
 0x1fb   :  { %v2153_v61 = vcombine.low %v2082_v55, %v2083_v58  ;;  %v2154_v62 = vcombine.low %v2084_v56, %v2085_v59 }
 0x1fd   :  { %v2175_v63 = vrot.slane %v2153_v61, %v4492_v5  ;;  %v2182_v0 = vrot.slane %v2154_v62, %v4492_v5 }
 0x1ff   :  { %v2184_v36 = vcombine.low %v2175_v63, %v2182_v0 }
 0x201   :  { %v2198_v10 = vrot.slane %v2184_v36, %v4492_v5 }
 0x203   :  { %v2199_v11 = vcombine.low %v2191_v1, %v2198_v10 }
 0x205   :  { %2203 = vst [vmem:[#allocation3 + $0x8] sm:$0xff] %v2199_v11 }
 0x206   :  { %3227 = shalt.err (!%p3224_p4)
}
 0x207   :  { %s3228_s14 = scalar_lea.hbm %s4600_s4, 256 }
 0x208   :  { %p3229_p5 = scmp.ne.s32.totalorder %s4600_s4, %s3228_s14  ;;  %p3232_p6 = scmp.lt.u32.totalorder %s3228_s14, %s4600_s4 }
 0x20a   :  { %p3234_p7 = pnand %p3232_p6, %p3229_p5 }
 0x20c   :  { %3237 = shalt.err (!%p3234_p7)
}
 0x20d   :  { %2213 = dma.vmem_to_hbm [thread:$0]  %s2211_s10, 256, %s4600_s4, [#allocation4]  }
 0x20e   :  { %3238 = dma.done.wait [#allocation4], 256  }
 0x20f   :  { %3239 = vsyncadd [#allocation4], 4294967040 }
 0x210   :  { %2217 = vsyncpa [#allocation4], 1 }

</bundles_post_ra>
